<compile_context>
chip_gen: v6e
topology: v6e:2x2x1
jax: 0.10.0
libtpu: 0.0.40
codegen_flags: <defaults>
</compile_context>

<pallas_src>
import functools

import jax
import jax.numpy as jnp
from jax.experimental import pallas as pl
from jax.experimental.pallas import tpu as pltpu


# ----------------------------- Pallas kernel --------------------------------

def _bilstm_fused_kernel(x_ref, wihcat_ref, bgcat_ref, whh_ref, wemb_ref,
                         bemb_ref, out_ref, gx_scr, hf_scr, hb_scr,
                         *, T, B, H):
    """Single invocation: fwd + bwd LSTM interleaved, fused embedding Linear.

    B is the *padded* batch (multiple of 8).  Gate order is PyTorch's i,f,g,o.
    """
    G = 4 * H

    # ---- 1. Hoisted input projection for BOTH directions: one wide MXU dot.
    #      gx columns = [fwd gates (4H) | bwd gates (4H)], bias folded in.
    gx_scr[...] = (
        jnp.dot(x_ref[...], wihcat_ref[...],
                preferred_element_type=jnp.float32)
        + bgcat_ref[...])

    whh_f = whh_ref[0]                       # (H, 4H) bf16, resident
    whh_b = whh_ref[1]                       # (H, 4H) bf16, resident

    def lstm_cell(gates, c):
        # f32 gate math (v5e has no bf16 VPU/EUP).
        i = jax.nn.sigmoid(gates[:, 0 * H:1 * H])
        f = jax.nn.sigmoid(gates[:, 1 * H:2 * H])
        g = jnp.tanh(gates[:, 2 * H:3 * H])
        o = jax.nn.sigmoid(gates[:, 3 * H:4 * H])
        c = f * c + i * g
        h = o * jnp.tanh(c)
        return h, c

    def step(t, carry):
        hf, cf, hb, cb = carry
        # Sublane-aligned (multiple-of-8) dynamic row offsets.
        rof = pl.multiple_of(t * B, B)                 # fwd reads time t
        rob = pl.multiple_of((T - 1 - t) * B, B)       # bwd reads time T-1-t

        # Two independent chains -> ILP across MXU / EUP on the critical path.
        gates_f = gx_scr[pl.ds(rof, B), 0:G] + jnp.dot(
            hf.astype(jnp.bfloat16), whh_f, preferred_element_type=jnp.float32)
        gates_b = gx_scr[pl.ds(rob, B), G:2 * G] + jnp.dot(
            hb.astype(jnp.bfloat16), whh_b, preferred_element_type=jnp.float32)

        hf, cf = lstm_cell(gates_f, cf)
        hb, cb = lstm_cell(gates_b, cb)

        # Store h history in *original* time order (8-sublane-aligned stores);
        # no output flip needed for the backward direction.
        hf_scr[pl.ds(rof, B), :] = hf
        hb_scr[pl.ds(rob, B), :] = hb
        return hf, cf, hb, cb

    zeros = jnp.zeros((B, H), jnp.float32)
    jax.lax.fori_loop(0, T, step, (zeros, zeros, zeros, zeros), unroll=True)

    # ---- 3. Fused embedding Linear: out = h_f @ W_f + h_b @ W_b + b_emb ----
    out = (jnp.dot(hf_scr[...].astype(jnp.bfloat16), wemb_ref[0],
                   preferred_element_type=jnp.float32)
           + jnp.dot(hb_scr[...].astype(jnp.bfloat16), wemb_ref[1],
                     preferred_element_type=jnp.float32)
           + bemb_ref[...])
    out_ref[...] = out.astype(out_ref.dtype)          # lane-dense (128) store


# ------------------------------ JAX wrapper ----------------------------------

def _round_up(x, m):
    return (x + m - 1) // m * m


def bidirectional_lstm_forward(x, params):
    """Replicates BidirectionalLSTM.forward for x of shape (T, B, nIn)."""
    T, B, nIn = x.shape
    H = params["w_hh"].shape[1]              # stacked (2, H, 4H)
    nOut = params["w_emb_dir"].shape[-1]     # stacked (2, H, nOut)

    Bp = _round_up(B, 8)                     # sublane-dense batch
    nOutp = _round_up(nOut, 128)             # lane-dense output stores

    # Pad batch with zero rows (independent per-row LSTM; sliced off below).
    x_p = jnp.pad(x, ((0, 0), (0, Bp - B), (0, 0)))
    x2d = x_p.reshape(T * Bp, nIn).astype(jnp.bfloat16)

    # Weights: bf16 for the MXU, biases stay f32 (added post-matmul).
    w_ih_cat = jnp.concatenate(
        [params["w_ih"][0], params["w_ih"][1]], axis=-1).astype(jnp.bfloat16)
    b_cat = jnp.concatenate([params["b_g"][0], params["b_g"][1]], axis=-1)
    w_hh = params["w_hh"].astype(jnp.bfloat16)                      # (2,H,4H)
    w_emb = jnp.pad(params["w_emb_dir"],
                    ((0, 0), (0, 0), (0, nOutp - nOut))).astype(jnp.bfloat16)
    b_emb = jnp.pad(params["b_emb"], ((0, 0), (0, nOutp - nOut)))   # (1,nOutp)

    kernel = functools.partial(_bilstm_fused_kernel, T=T, B=Bp, H=H)

    out2d = pl.pallas_call(
        kernel,
        out_shape=jax.ShapeDtypeStruct((T * Bp, nOutp), jnp.float32),
        grid=(1,),
        in_specs=[
            pl.BlockSpec((T * Bp, nIn), lambda i: (0, 0)),        # x (resident)
            pl.BlockSpec((nIn, 8 * H), lambda i: (0, 0)),         # [W_ih_f|W_ih_b]
            pl.BlockSpec((1, 8 * H), lambda i: (0, 0)),           # [b_f|b_b]
            pl.BlockSpec((2, H, 4 * H), lambda i: (0, 0, 0)),     # W_hh (both)
            pl.BlockSpec((2, H, nOutp), lambda i: (0, 0, 0)),     # W_emb halves
            pl.BlockSpec((1, nOutp), lambda i: (0, 0)),           # b_emb
        ],
        out_specs=pl.BlockSpec((T * Bp, nOutp), lambda i: (0, 0)),
        scratch_shapes=[
            pltpu.VMEM((T * Bp, 8 * H), jnp.float32),   # gx, both directions
            pltpu.VMEM((T * Bp, H), jnp.float32),       # fwd h history
            pltpu.VMEM((T * Bp, H), jnp.float32),       # bwd h history
        ],
        compiler_params=pltpu.CompilerParams(
            dimension_semantics=("arbitrary",)),
    )(x2d, w_ih_cat, b_cat, w_hh, w_emb, b_emb)

    return out2d.reshape(T, Bp, nOutp)[:, :B, :nOut]


# --------------------------- pure-JAX reference ------------------------------

def _lstm_dir_ref(x, w_ih, w_hh, bias, reverse):
    B = x.shape[1]
    H = w_hh.shape[0]

    def step(carry, xt):
        h, c = carry
        gates = xt @ w_ih + h @ w_hh + bias[0]
        i = jax.nn.sigmoid(gates[:, 0 * H:1 * H])
        f = jax.nn.sigmoid(gates[:, 1 * H:2 * H])
        g = jnp.tanh(gates[:, 2 * H:3 * H])
        o = jax.nn.sigmoid(gates[:, 3 * H:4 * H])
        c = f * c + i * g
        h = o * jnp.tanh(c)
        return (h, c), h

    xs = x[::-1] if reverse else x
    _, hs = jax.lax.scan(step, (jnp.zeros((B, H)), jnp.zeros((B, H))), xs)
    return hs[::-1] if reverse else hs


def bidirectional_lstm_ref(x, params):
    T, B, _ = x.shape
    h_f = _lstm_dir_ref(x, params["w_ih"][0], params["w_hh"][0],
                        params["b_g"][0], reverse=False)
    h_b = _lstm_dir_ref(x, params["w_ih"][1], params["w_hh"][1],
                        params["b_g"][1], reverse=True)
    rec = jnp.concatenate([h_f, h_b], axis=-1).reshape(T * B, -1)
    w_emb = jnp.concatenate([params["w_emb_dir"][0], params["w_emb_dir"][1]], 0)
    out = rec @ w_emb + params["b_emb"][0]
    return out.reshape(T, B, -1)


# ----------------------------------- main ------------------------------------

def init_params(key, nIn, nHidden, nOut):
    """Deterministic synthetic parameters (PyTorch-style U(-1/sqrt(H), 1/sqrt(H))),
    pre-transposed for right-multiplication and stacked over direction."""
    ks = jax.random.split(key, 10)
    s = 1.0 / jnp.sqrt(nHidden)

    def u(k, shape):
        return jax.random.uniform(k, shape, jnp.float32, -s, s)

    w_ih = jnp.stack([u(ks[0], (nIn, 4 * nHidden)),
                      u(ks[1], (nIn, 4 * nHidden))])                # (2, nIn, 4H)
    w_hh = jnp.stack([u(ks[2], (nHidden, 4 * nHidden)),
                      u(ks[3], (nHidden, 4 * nHidden))])            # (2, H, 4H)
    b_g = jnp.stack([u(ks[4], (1, 4 * nHidden)) + u(ks[5], (1, 4 * nHidden)),
                     u(ks[6], (1, 4 * nHidden)) + u(ks[7], (1, 4 * nHidden))])
    w_emb = u(ks[8], (2 * nHidden, nOut))                           # Linear W^T
    b_emb = u(ks[9], (1, nOut))
    # Split embedding weight into forward / backward halves (PyTorch
    # bidirectional output is [h_fwd, h_bwd] concatenated on the feature dim).
    w_emb_dir = jnp.stack([w_emb[:nHidden], w_emb[nHidden:]])       # (2, H, nOut)

    return dict(w_ih=w_ih, w_hh=w_hh, b_g=b_g,
                w_emb_dir=w_emb_dir, b_emb=b_emb)


if __name__ == "__main__":
    T, B, nIn, nHidden, nOut = 8, 2, 32, 32, 16

    key = jax.random.PRNGKey(0)
    k_x, k_p = jax.random.split(key)
    x = jax.random.normal(k_x, (T, B, nIn), jnp.float32)
    params = init_params(k_p, nIn, nHidden, nOut)

    out = bidirectional_lstm_forward(x, params)
    out = jax.block_until_ready(out)

    ref = bidirectional_lstm_ref(x, params)
    assert out.shape == (T, B, nOut)
    # bf16 MXU operands vs fp32 reference -> relaxed tolerance (still far
    # tighter than any gate-order / time-ordering / bias bug would allow).
    assert jnp.allclose(out, ref, atol=2e-2, rtol=2e-2), "mismatch vs reference"

    print("KERNEL_OK")
</pallas_src>

<mosaic_0001>
module attributes {stable_mosaic.version = 11 : i64} {
  func.func @_bilstm_fused_kernel(%arg0: i32, %arg1: memref<64x32xbf16, #tpu.memory_space<vmem>>, %arg2: memref<32x256xbf16, #tpu.memory_space<vmem>>, %arg3: memref<1x256xf32, #tpu.memory_space<vmem>>, %arg4: memref<2x32x128xbf16, #tpu.memory_space<vmem>>, %arg5: memref<2x32x128xbf16, #tpu.memory_space<vmem>>, %arg6: memref<1x128xf32, #tpu.memory_space<vmem>>, %arg7: memref<64x128xf32, #tpu.memory_space<vmem>>, %arg8: memref<64x256xf32, #tpu.memory_space<vmem>>, %arg9: memref<64x32xf32, #tpu.memory_space<vmem>>, %arg10: memref<64x32xf32, #tpu.memory_space<vmem>>) attributes {dimension_semantics = [#tpu.dimension_semantics<arbitrary>], iteration_bounds = array<i64: 1>, scalar_prefetch = 0 : i64, scratch_operands = 3 : i64, tpu.core_type = #tpu.core_type<tc>, window_params = [{pipeline_mode = #tpu.pipeline_mode<synchronous>, transform_indices = @transform_0, window_bounds = array<i64: 64, 32>}, {pipeline_mode = #tpu.pipeline_mode<synchronous>, transform_indices = @transform_1, window_bounds = array<i64: 32, 256>}, {pipeline_mode = #tpu.pipeline_mode<synchronous>, transform_indices = @transform_2, window_bounds = array<i64: 1, 256>}, {pipeline_mode = #tpu.pipeline_mode<synchronous>, transform_indices = @transform_3, window_bounds = array<i64: 2, 32, 128>}, {pipeline_mode = #tpu.pipeline_mode<synchronous>, transform_indices = @transform_4, window_bounds = array<i64: 2, 32, 128>}, {pipeline_mode = #tpu.pipeline_mode<synchronous>, transform_indices = @transform_5, window_bounds = array<i64: 1, 128>}, {pipeline_mode = #tpu.pipeline_mode<synchronous>, transform_indices = @transform_6, window_bounds = array<i64: 64, 128>}]} {
    %c0 = arith.constant 0 : index
    %c0_0 = arith.constant 0 : index
    %0 = vector.load %arg1[%c0, %c0_0] : memref<64x32xbf16, #tpu.memory_space<vmem>>, vector<64x32xbf16>
    %c0_1 = arith.constant 0 : index
    %c0_2 = arith.constant 0 : index
    %1 = vector.load %arg2[%c0_1, %c0_2] : memref<32x256xbf16, #tpu.memory_space<vmem>>, vector<32x256xbf16>
    %cst = arith.constant dense<0.000000e+00> : vector<64x256xf32>
    %2 = tpu.matmul %0, %1, %cst {dimension_numbers = #tpu.dot_dimension_numbers<[1], [0], [0], [1], [0, 0, 1, 1], [], []>} : vector<64x32xbf16>, vector<32x256xbf16>, vector<64x256xf32> -> vector<64x256xf32>
    %c0_3 = arith.constant 0 : index
    %c0_4 = arith.constant 0 : index
    %3 = vector.load %arg3[%c0_3, %c0_4] : memref<1x256xf32, #tpu.memory_space<vmem>>, vector<1x256xf32>
    %4 = vector.broadcast %3 : vector<1x256xf32> to vector<64x256xf32>
    %5 = arith.addf %2, %4 : vector<64x256xf32>
    %c0_5 = arith.constant 0 : index
    %c0_6 = arith.constant 0 : index
    %6 = vector.load %arg8[%c0_5, %c0_6] : memref<64x256xf32, #tpu.memory_space<vmem>>, vector<64x256xf32>
    tpu.vector_store %arg8[%c0_5, %c0_6], %5 {strides = array<i32>} : memref<64x256xf32, #tpu.memory_space<vmem>>, vector<64x256xf32>,
    %c0_7 = arith.constant 0 : index
    %c0_8 = arith.constant 0 : index
    %c0_9 = arith.constant 0 : index
    %7 = vector.load %arg4[%c0_7, %c0_8, %c0_9] : memref<2x32x128xbf16, #tpu.memory_space<vmem>>, vector<1x32x128xbf16>
    %8 = vector.shape_cast %7 : vector<1x32x128xbf16> to vector<32x128xbf16>
    %c1 = arith.constant 1 : index
    %c0_10 = arith.constant 0 : index
    %c0_11 = arith.constant 0 : index
    %9 = vector.load %arg4[%c1, %c0_10, %c0_11] : memref<2x32x128xbf16, #tpu.memory_space<vmem>>, vector<1x32x128xbf16>
    %10 = vector.shape_cast %9 : vector<1x32x128xbf16> to vector<32x128xbf16>
    %cst_12 = arith.constant 0.000000e+00 : f32
    %11 = vector.broadcast %cst_12 : f32 to vector<8x32xf32>
    %c0_i32 = arith.constant 0 : i32
    %c8_i32 = arith.constant 8 : i32
    %12 = arith.muli %c0_i32, %c8_i32 : i32
    %13 = tpu.assume_multiple %12, 8 : i32
    %c7_i32 = arith.constant 7 : i32
    %14 = arith.subi %c7_i32, %c0_i32 : i32
    %c8_i32_13 = arith.constant 8 : i32
    %15 = arith.muli %14, %c8_i32_13 : i32
    %16 = tpu.assume_multiple %15, 8 : i32
    %17 = arith.index_cast %13 : i32 to index
    %c0_14 = arith.constant 0 : index
    %18 = vector.load %arg8[%17, %c0_14] : memref<64x256xf32, #tpu.memory_space<vmem>>, vector<8x128xf32>
    %19 = arith.truncf %11 : vector<8x32xf32> to vector<8x32xbf16>
    %cst_15 = arith.constant dense<0.000000e+00> : vector<8x128xf32>
    %20 = tpu.matmul %19, %8, %cst_15 {dimension_numbers = #tpu.dot_dimension_numbers<[1], [0], [0], [1], [0, 0, 1, 1], [], []>} : vector<8x32xbf16>, vector<32x128xbf16>, vector<8x128xf32> -> vector<8x128xf32>
    %21 = arith.addf %18, %20 : vector<8x128xf32>
    %22 = arith.index_cast %16 : i32 to index
    %c128 = arith.constant 128 : index
    %23 = vector.load %arg8[%22, %c128] : memref<64x256xf32, #tpu.memory_space<vmem>>, vector<8x128xf32>
    %24 = arith.truncf %11 : vector<8x32xf32> to vector<8x32xbf16>
    %cst_16 = arith.constant dense<0.000000e+00> : vector<8x128xf32>
    %25 = tpu.matmul %24, %10, %cst_16 {dimension_numbers = #tpu.dot_dimension_numbers<[1], [0], [0], [1], [0, 0, 1, 1], [], []>} : vector<8x32xbf16>, vector<32x128xbf16>, vector<8x128xf32> -> vector<8x128xf32>
    %26 = arith.addf %23, %25 : vector<8x128xf32>
    %27 = vector.extract_strided_slice %21 {offsets = [0, 0], sizes = [8, 32], strides = [1, 1]} : vector<8x128xf32> to vector<8x32xf32>
    %28 = arith.negf %27 : vector<8x32xf32>
    %29 = math.exp %28 : vector<8x32xf32>
    %cst_17 = arith.constant 1.000000e+00 : f32
    %30 = vector.broadcast %cst_17 : f32 to vector<8x32xf32>
    %31 = arith.addf %30, %29 : vector<8x32xf32>
    %32 = arith.divf %30, %31 : vector<8x32xf32>
    %33 = vector.extract_strided_slice %21 {offsets = [0, 32], sizes = [8, 32], strides = [1, 1]} : vector<8x128xf32> to vector<8x32xf32>
    %34 = arith.negf %33 : vector<8x32xf32>
    %35 = math.exp %34 : vector<8x32xf32>
    %cst_18 = arith.constant 1.000000e+00 : f32
    %36 = vector.broadcast %cst_18 : f32 to vector<8x32xf32>
    %37 = arith.addf %36, %35 : vector<8x32xf32>
    %38 = arith.divf %36, %37 : vector<8x32xf32>
    %39 = vector.extract_strided_slice %21 {offsets = [0, 64], sizes = [8, 32], strides = [1, 1]} : vector<8x128xf32> to vector<8x32xf32>
    %40 = math.tanh %39 : vector<8x32xf32>
    %41 = vector.extract_strided_slice %21 {offsets = [0, 96], sizes = [8, 32], strides = [1, 1]} : vector<8x128xf32> to vector<8x32xf32>
    %42 = arith.negf %41 : vector<8x32xf32>
    %43 = math.exp %42 : vector<8x32xf32>
    %cst_19 = arith.constant 1.000000e+00 : f32
    %44 = vector.broadcast %cst_19 : f32 to vector<8x32xf32>
    %45 = arith.addf %44, %43 : vector<8x32xf32>
    %46 = arith.divf %44, %45 : vector<8x32xf32>
    %47 = arith.mulf %38, %11 : vector<8x32xf32>
    %48 = arith.mulf %32, %40 : vector<8x32xf32>
    %49 = arith.addf %47, %48 : vector<8x32xf32>
    %50 = math.tanh %49 : vector<8x32xf32>
    %51 = arith.mulf %46, %50 : vector<8x32xf32>
    %52 = vector.extract_strided_slice %26 {offsets = [0, 0], sizes = [8, 32], strides = [1, 1]} : vector<8x128xf32> to vector<8x32xf32>
    %53 = arith.negf %52 : vector<8x32xf32>
    %54 = math.exp %53 : vector<8x32xf32>
    %cst_20 = arith.constant 1.000000e+00 : f32
    %55 = vector.broadcast %cst_20 : f32 to vector<8x32xf32>
    %56 = arith.addf %55, %54 : vector<8x32xf32>
    %57 = arith.divf %55, %56 : vector<8x32xf32>
    %58 = vector.extract_strided_slice %26 {offsets = [0, 32], sizes = [8, 32], strides = [1, 1]} : vector<8x128xf32> to vector<8x32xf32>
    %59 = arith.negf %58 : vector<8x32xf32>
    %60 = math.exp %59 : vector<8x32xf32>
    %cst_21 = arith.constant 1.000000e+00 : f32
    %61 = vector.broadcast %cst_21 : f32 to vector<8x32xf32>
    %62 = arith.addf %61, %60 : vector<8x32xf32>
    %63 = arith.divf %61, %62 : vector<8x32xf32>
    %64 = vector.extract_strided_slice %26 {offsets = [0, 64], sizes = [8, 32], strides = [1, 1]} : vector<8x128xf32> to vector<8x32xf32>
    %65 = math.tanh %64 : vector<8x32xf32>
    %66 = vector.extract_strided_slice %26 {offsets = [0, 96], sizes = [8, 32], strides = [1, 1]} : vector<8x128xf32> to vector<8x32xf32>
    %67 = arith.negf %66 : vector<8x32xf32>
    %68 = math.exp %67 : vector<8x32xf32>
    %cst_22 = arith.constant 1.000000e+00 : f32
    %69 = vector.broadcast %cst_22 : f32 to vector<8x32xf32>
    %70 = arith.addf %69, %68 : vector<8x32xf32>
    %71 = arith.divf %69, %70 : vector<8x32xf32>
    %72 = arith.mulf %63, %11 : vector<8x32xf32>
    %73 = arith.mulf %57, %65 : vector<8x32xf32>
    %74 = arith.addf %72, %73 : vector<8x32xf32>
    %75 = math.tanh %74 : vector<8x32xf32>
    %76 = arith.mulf %71, %75 : vector<8x32xf32>
    %77 = arith.index_cast %13 : i32 to index
    %c0_23 = arith.constant 0 : index
    %78 = vector.load %arg9[%77, %c0_23] : memref<64x32xf32, #tpu.memory_space<vmem>>, vector<8x32xf32>
    tpu.vector_store %arg9[%77, %c0_23], %51 {strides = array<i32>} : memref<64x32xf32, #tpu.memory_space<vmem>>, vector<8x32xf32>,
    %79 = arith.index_cast %16 : i32 to index
    %c0_24 = arith.constant 0 : index
    %80 = vector.load %arg10[%79, %c0_24] : memref<64x32xf32, #tpu.memory_space<vmem>>, vector<8x32xf32>
    tpu.vector_store %arg10[%79, %c0_24], %76 {strides = array<i32>} : memref<64x32xf32, #tpu.memory_space<vmem>>, vector<8x32xf32>,
    %c1_i32 = arith.constant 1 : i32
    %c8_i32_25 = arith.constant 8 : i32
    %81 = arith.muli %c1_i32, %c8_i32_25 : i32
    %82 = tpu.assume_multiple %81, 8 : i32
    %c7_i32_26 = arith.constant 7 : i32
    %83 = arith.subi %c7_i32_26, %c1_i32 : i32
    %c8_i32_27 = arith.constant 8 : i32
    %84 = arith.muli %83, %c8_i32_27 : i32
    %85 = tpu.assume_multiple %84, 8 : i32
    %86 = arith.index_cast %82 : i32 to index
    %c0_28 = arith.constant 0 : index
    %87 = vector.load %arg8[%86, %c0_28] : memref<64x256xf32, #tpu.memory_space<vmem>>, vector<8x128xf32>
    %88 = arith.truncf %51 : vector<8x32xf32> to vector<8x32xbf16>
    %cst_29 = arith.constant dense<0.000000e+00> : vector<8x128xf32>
    %89 = tpu.matmul %88, %8, %cst_29 {dimension_numbers = #tpu.dot_dimension_numbers<[1], [0], [0], [1], [0, 0, 1, 1], [], []>} : vector<8x32xbf16>, vector<32x128xbf16>, vector<8x128xf32> -> vector<8x128xf32>
    %90 = arith.addf %87, %89 : vector<8x128xf32>
    %91 = arith.index_cast %85 : i32 to index
    %c128_30 = arith.constant 128 : index
    %92 = vector.load %arg8[%91, %c128_30] : memref<64x256xf32, #tpu.memory_space<vmem>>, vector<8x128xf32>
    %93 = arith.truncf %76 : vector<8x32xf32> to vector<8x32xbf16>
    %cst_31 = arith.constant dense<0.000000e+00> : vector<8x128xf32>
    %94 = tpu.matmul %93, %10, %cst_31 {dimension_numbers = #tpu.dot_dimension_numbers<[1], [0], [0], [1], [0, 0, 1, 1], [], []>} : vector<8x32xbf16>, vector<32x128xbf16>, vector<8x128xf32> -> vector<8x128xf32>
    %95 = arith.addf %92, %94 : vector<8x128xf32>
    %96 = vector.extract_strided_slice %90 {offsets = [0, 0], sizes = [8, 32], strides = [1, 1]} : vector<8x128xf32> to vector<8x32xf32>
    %97 = arith.negf %96 : vector<8x32xf32>
    %98 = math.exp %97 : vector<8x32xf32>
    %cst_32 = arith.constant 1.000000e+00 : f32
    %99 = vector.broadcast %cst_32 : f32 to vector<8x32xf32>
    %100 = arith.addf %99, %98 : vector<8x32xf32>
    %101 = arith.divf %99, %100 : vector<8x32xf32>
    %102 = vector.extract_strided_slice %90 {offsets = [0, 32], sizes = [8, 32], strides = [1, 1]} : vector<8x128xf32> to vector<8x32xf32>
    %103 = arith.negf %102 : vector<8x32xf32>
    %104 = math.exp %103 : vector<8x32xf32>
    %cst_33 = arith.constant 1.000000e+00 : f32
    %105 = vector.broadcast %cst_33 : f32 to vector<8x32xf32>
    %106 = arith.addf %105, %104 : vector<8x32xf32>
    %107 = arith.divf %105, %106 : vector<8x32xf32>
    %108 = vector.extract_strided_slice %90 {offsets = [0, 64], sizes = [8, 32], strides = [1, 1]} : vector<8x128xf32> to vector<8x32xf32>
    %109 = math.tanh %108 : vector<8x32xf32>
    %110 = vector.extract_strided_slice %90 {offsets = [0, 96], sizes = [8, 32], strides = [1, 1]} : vector<8x128xf32> to vector<8x32xf32>
    %111 = arith.negf %110 : vector<8x32xf32>
    %112 = math.exp %111 : vector<8x32xf32>
    %cst_34 = arith.constant 1.000000e+00 : f32
    %113 = vector.broadcast %cst_34 : f32 to vector<8x32xf32>
    %114 = arith.addf %113, %112 : vector<8x32xf32>
    %115 = arith.divf %113, %114 : vector<8x32xf32>
    %116 = arith.mulf %107, %49 : vector<8x32xf32>
    %117 = arith.mulf %101, %109 : vector<8x32xf32>
    %118 = arith.addf %116, %117 : vector<8x32xf32>
    %119 = math.tanh %118 : vector<8x32xf32>
    %120 = arith.mulf %115, %119 : vector<8x32xf32>
    %121 = vector.extract_strided_slice %95 {offsets = [0, 0], sizes = [8, 32], strides = [1, 1]} : vector<8x128xf32> to vector<8x32xf32>
    %122 = arith.negf %121 : vector<8x32xf32>
    %123 = math.exp %122 : vector<8x32xf32>
    %cst_35 = arith.constant 1.000000e+00 : f32
    %124 = vector.broadcast %cst_35 : f32 to vector<8x32xf32>
    %125 = arith.addf %124, %123 : vector<8x32xf32>
    %126 = arith.divf %124, %125 : vector<8x32xf32>
    %127 = vector.extract_strided_slice %95 {offsets = [0, 32], sizes = [8, 32], strides = [1, 1]} : vector<8x128xf32> to vector<8x32xf32>
    %128 = arith.negf %127 : vector<8x32xf32>
    %129 = math.exp %128 : vector<8x32xf32>
    %cst_36 = arith.constant 1.000000e+00 : f32
    %130 = vector.broadcast %cst_36 : f32 to vector<8x32xf32>
    %131 = arith.addf %130, %129 : vector<8x32xf32>
    %132 = arith.divf %130, %131 : vector<8x32xf32>
    %133 = vector.extract_strided_slice %95 {offsets = [0, 64], sizes = [8, 32], strides = [1, 1]} : vector<8x128xf32> to vector<8x32xf32>
    %134 = math.tanh %133 : vector<8x32xf32>
    %135 = vector.extract_strided_slice %95 {offsets = [0, 96], sizes = [8, 32], strides = [1, 1]} : vector<8x128xf32> to vector<8x32xf32>
    %136 = arith.negf %135 : vector<8x32xf32>
    %137 = math.exp %136 : vector<8x32xf32>
    %cst_37 = arith.constant 1.000000e+00 : f32
    %138 = vector.broadcast %cst_37 : f32 to vector<8x32xf32>
    %139 = arith.addf %138, %137 : vector<8x32xf32>
    %140 = arith.divf %138, %139 : vector<8x32xf32>
    %141 = arith.mulf %132, %74 : vector<8x32xf32>
    %142 = arith.mulf %126, %134 : vector<8x32xf32>
    %143 = arith.addf %141, %142 : vector<8x32xf32>
    %144 = math.tanh %143 : vector<8x32xf32>
    %145 = arith.mulf %140, %144 : vector<8x32xf32>
    %146 = arith.index_cast %82 : i32 to index
    %c0_38 = arith.constant 0 : index
    %147 = vector.load %arg9[%146, %c0_38] : memref<64x32xf32, #tpu.memory_space<vmem>>, vector<8x32xf32>
    tpu.vector_store %arg9[%146, %c0_38], %120 {strides = array<i32>} : memref<64x32xf32, #tpu.memory_space<vmem>>, vector<8x32xf32>,
    %148 = arith.index_cast %85 : i32 to index
    %c0_39 = arith.constant 0 : index
    %149 = vector.load %arg10[%148, %c0_39] : memref<64x32xf32, #tpu.memory_space<vmem>>, vector<8x32xf32>
    tpu.vector_store %arg10[%148, %c0_39], %145 {strides = array<i32>} : memref<64x32xf32, #tpu.memory_space<vmem>>, vector<8x32xf32>,
    %c2_i32 = arith.constant 2 : i32
    %c8_i32_40 = arith.constant 8 : i32
    %150 = arith.muli %c2_i32, %c8_i32_40 : i32
    %151 = tpu.assume_multiple %150, 8 : i32
    %c7_i32_41 = arith.constant 7 : i32
    %152 = arith.subi %c7_i32_41, %c2_i32 : i32
    %c8_i32_42 = arith.constant 8 : i32
    %153 = arith.muli %152, %c8_i32_42 : i32
    %154 = tpu.assume_multiple %153, 8 : i32
    %155 = arith.index_cast %151 : i32 to index
    %c0_43 = arith.constant 0 : index
    %156 = vector.load %arg8[%155, %c0_43] : memref<64x256xf32, #tpu.memory_space<vmem>>, vector<8x128xf32>
    %157 = arith.truncf %120 : vector<8x32xf32> to vector<8x32xbf16>
    %cst_44 = arith.constant dense<0.000000e+00> : vector<8x128xf32>
    %158 = tpu.matmul %157, %8, %cst_44 {dimension_numbers = #tpu.dot_dimension_numbers<[1], [0], [0], [1], [0, 0, 1, 1], [], []>} : vector<8x32xbf16>, vector<32x128xbf16>, vector<8x128xf32> -> vector<8x128xf32>
    %159 = arith.addf %156, %158 : vector<8x128xf32>
    %160 = arith.index_cast %154 : i32 to index
    %c128_45 = arith.constant 128 : index
    %161 = vector.load %arg8[%160, %c128_45] : memref<64x256xf32, #tpu.memory_space<vmem>>, vector<8x128xf32>
    %162 = arith.truncf %145 : vector<8x32xf32> to vector<8x32xbf16>
    %cst_46 = arith.constant dense<0.000000e+00> : vector<8x128xf32>
    %163 = tpu.matmul %162, %10, %cst_46 {dimension_numbers = #tpu.dot_dimension_numbers<[1], [0], [0], [1], [0, 0, 1, 1], [], []>} : vector<8x32xbf16>, vector<32x128xbf16>, vector<8x128xf32> -> vector<8x128xf32>
    %164 = arith.addf %161, %163 : vector<8x128xf32>
    %165 = vector.extract_strided_slice %159 {offsets = [0, 0], sizes = [8, 32], strides = [1, 1]} : vector<8x128xf32> to vector<8x32xf32>
    %166 = arith.negf %165 : vector<8x32xf32>
    %167 = math.exp %166 : vector<8x32xf32>
    %cst_47 = arith.constant 1.000000e+00 : f32
    %168 = vector.broadcast %cst_47 : f32 to vector<8x32xf32>
    %169 = arith.addf %168, %167 : vector<8x32xf32>
    %170 = arith.divf %168, %169 : vector<8x32xf32>
    %171 = vector.extract_strided_slice %159 {offsets = [0, 32], sizes = [8, 32], strides = [1, 1]} : vector<8x128xf32> to vector<8x32xf32>
    %172 = arith.negf %171 : vector<8x32xf32>
    %173 = math.exp %172 : vector<8x32xf32>
    %cst_48 = arith.constant 1.000000e+00 : f32
    %174 = vector.broadcast %cst_48 : f32 to vector<8x32xf32>
    %175 = arith.addf %174, %173 : vector<8x32xf32>
    %176 = arith.divf %174, %175 : vector<8x32xf32>
    %177 = vector.extract_strided_slice %159 {offsets = [0, 64], sizes = [8, 32], strides = [1, 1]} : vector<8x128xf32> to vector<8x32xf32>
    %178 = math.tanh %177 : vector<8x32xf32>
    %179 = vector.extract_strided_slice %159 {offsets = [0, 96], sizes = [8, 32], strides = [1, 1]} : vector<8x128xf32> to vector<8x32xf32>
    %180 = arith.negf %179 : vector<8x32xf32>
    %181 = math.exp %180 : vector<8x32xf32>
    %cst_49 = arith.constant 1.000000e+00 : f32
    %182 = vector.broadcast %cst_49 : f32 to vector<8x32xf32>
    %183 = arith.addf %182, %181 : vector<8x32xf32>
    %184 = arith.divf %182, %183 : vector<8x32xf32>
    %185 = arith.mulf %176, %118 : vector<8x32xf32>
    %186 = arith.mulf %170, %178 : vector<8x32xf32>
    %187 = arith.addf %185, %186 : vector<8x32xf32>
    %188 = math.tanh %187 : vector<8x32xf32>
    %189 = arith.mulf %184, %188 : vector<8x32xf32>
    %190 = vector.extract_strided_slice %164 {offsets = [0, 0], sizes = [8, 32], strides = [1, 1]} : vector<8x128xf32> to vector<8x32xf32>
    %191 = arith.negf %190 : vector<8x32xf32>
    %192 = math.exp %191 : vector<8x32xf32>
    %cst_50 = arith.constant 1.000000e+00 : f32
    %193 = vector.broadcast %cst_50 : f32 to vector<8x32xf32>
    %194 = arith.addf %193, %192 : vector<8x32xf32>
    %195 = arith.divf %193, %194 : vector<8x32xf32>
    %196 = vector.extract_strided_slice %164 {offsets = [0, 32], sizes = [8, 32], strides = [1, 1]} : vector<8x128xf32> to vector<8x32xf32>
    %197 = arith.negf %196 : vector<8x32xf32>
    %198 = math.exp %197 : vector<8x32xf32>
    %cst_51 = arith.constant 1.000000e+00 : f32
    %199 = vector.broadcast %cst_51 : f32 to vector<8x32xf32>
    %200 = arith.addf %199, %198 : vector<8x32xf32>
    %201 = arith.divf %199, %200 : vector<8x32xf32>
    %202 = vector.extract_strided_slice %164 {offsets = [0, 64], sizes = [8, 32], strides = [1, 1]} : vector<8x128xf32> to vector<8x32xf32>
    %203 = math.tanh %202 : vector<8x32xf32>
    %204 = vector.extract_strided_slice %164 {offsets = [0, 96], sizes = [8, 32], strides = [1, 1]} : vector<8x128xf32> to vector<8x32xf32>
    %205 = arith.negf %204 : vector<8x32xf32>
    %206 = math.exp %205 : vector<8x32xf32>
    %cst_52 = arith.constant 1.000000e+00 : f32
    %207 = vector.broadcast %cst_52 : f32 to vector<8x32xf32>
    %208 = arith.addf %207, %206 : vector<8x32xf32>
    %209 = arith.divf %207, %208 : vector<8x32xf32>
    %210 = arith.mulf %201, %143 : vector<8x32xf32>
    %211 = arith.mulf %195, %203 : vector<8x32xf32>
    %212 = arith.addf %210, %211 : vector<8x32xf32>
    %213 = math.tanh %212 : vector<8x32xf32>
    %214 = arith.mulf %209, %213 : vector<8x32xf32>
    %215 = arith.index_cast %151 : i32 to index
    %c0_53 = arith.constant 0 : index
    %216 = vector.load %arg9[%215, %c0_53] : memref<64x32xf32, #tpu.memory_space<vmem>>, vector<8x32xf32>
    tpu.vector_store %arg9[%215, %c0_53], %189 {strides = array<i32>} : memref<64x32xf32, #tpu.memory_space<vmem>>, vector<8x32xf32>,
    %217 = arith.index_cast %154 : i32 to index
    %c0_54 = arith.constant 0 : index
    %218 = vector.load %arg10[%217, %c0_54] : memref<64x32xf32, #tpu.memory_space<vmem>>, vector<8x32xf32>
    tpu.vector_store %arg10[%217, %c0_54], %214 {strides = array<i32>} : memref<64x32xf32, #tpu.memory_space<vmem>>, vector<8x32xf32>,
    %c3_i32 = arith.constant 3 : i32
    %c8_i32_55 = arith.constant 8 : i32
    %219 = arith.muli %c3_i32, %c8_i32_55 : i32
    %220 = tpu.assume_multiple %219, 8 : i32
    %c7_i32_56 = arith.constant 7 : i32
    %221 = arith.subi %c7_i32_56, %c3_i32 : i32
    %c8_i32_57 = arith.constant 8 : i32
    %222 = arith.muli %221, %c8_i32_57 : i32
    %223 = tpu.assume_multiple %222, 8 : i32
    %224 = arith.index_cast %220 : i32 to index
    %c0_58 = arith.constant 0 : index
    %225 = vector.load %arg8[%224, %c0_58] : memref<64x256xf32, #tpu.memory_space<vmem>>, vector<8x128xf32>
    %226 = arith.truncf %189 : vector<8x32xf32> to vector<8x32xbf16>
    %cst_59 = arith.constant dense<0.000000e+00> : vector<8x128xf32>
    %227 = tpu.matmul %226, %8, %cst_59 {dimension_numbers = #tpu.dot_dimension_numbers<[1], [0], [0], [1], [0, 0, 1, 1], [], []>} : vector<8x32xbf16>, vector<32x128xbf16>, vector<8x128xf32> -> vector<8x128xf32>
    %228 = arith.addf %225, %227 : vector<8x128xf32>
    %229 = arith.index_cast %223 : i32 to index
    %c128_60 = arith.constant 128 : index
    %230 = vector.load %arg8[%229, %c128_60] : memref<64x256xf32, #tpu.memory_space<vmem>>, vector<8x128xf32>
    %231 = arith.truncf %214 : vector<8x32xf32> to vector<8x32xbf16>
    %cst_61 = arith.constant dense<0.000000e+00> : vector<8x128xf32>
    %232 = tpu.matmul %231, %10, %cst_61 {dimension_numbers = #tpu.dot_dimension_numbers<[1], [0], [0], [1], [0, 0, 1, 1], [], []>} : vector<8x32xbf16>, vector<32x128xbf16>, vector<8x128xf32> -> vector<8x128xf32>
    %233 = arith.addf %230, %232 : vector<8x128xf32>
    %234 = vector.extract_strided_slice %228 {offsets = [0, 0], sizes = [8, 32], strides = [1, 1]} : vector<8x128xf32> to vector<8x32xf32>
    %235 = arith.negf %234 : vector<8x32xf32>
    %236 = math.exp %235 : vector<8x32xf32>
    %cst_62 = arith.constant 1.000000e+00 : f32
    %237 = vector.broadcast %cst_62 : f32 to vector<8x32xf32>
    %238 = arith.addf %237, %236 : vector<8x32xf32>
    %239 = arith.divf %237, %238 : vector<8x32xf32>
    %240 = vector.extract_strided_slice %228 {offsets = [0, 32], sizes = [8, 32], strides = [1, 1]} : vector<8x128xf32> to vector<8x32xf32>
    %241 = arith.negf %240 : vector<8x32xf32>
    %242 = math.exp %241 : vector<8x32xf32>
    %cst_63 = arith.constant 1.000000e+00 : f32
    %243 = vector.broadcast %cst_63 : f32 to vector<8x32xf32>
    %244 = arith.addf %243, %242 : vector<8x32xf32>
    %245 = arith.divf %243, %244 : vector<8x32xf32>
    %246 = vector.extract_strided_slice %228 {offsets = [0, 64], sizes = [8, 32], strides = [1, 1]} : vector<8x128xf32> to vector<8x32xf32>
    %247 = math.tanh %246 : vector<8x32xf32>
    %248 = vector.extract_strided_slice %228 {offsets = [0, 96], sizes = [8, 32], strides = [1, 1]} : vector<8x128xf32> to vector<8x32xf32>
    %249 = arith.negf %248 : vector<8x32xf32>
    %250 = math.exp %249 : vector<8x32xf32>
    %cst_64 = arith.constant 1.000000e+00 : f32
    %251 = vector.broadcast %cst_64 : f32 to vector<8x32xf32>
    %252 = arith.addf %251, %250 : vector<8x32xf32>
    %253 = arith.divf %251, %252 : vector<8x32xf32>
    %254 = arith.mulf %245, %187 : vector<8x32xf32>
    %255 = arith.mulf %239, %247 : vector<8x32xf32>
    %256 = arith.addf %254, %255 : vector<8x32xf32>
    %257 = math.tanh %256 : vector<8x32xf32>
    %258 = arith.mulf %253, %257 : vector<8x32xf32>
    %259 = vector.extract_strided_slice %233 {offsets = [0, 0], sizes = [8, 32], strides = [1, 1]} : vector<8x128xf32> to vector<8x32xf32>
    %260 = arith.negf %259 : vector<8x32xf32>
    %261 = math.exp %260 : vector<8x32xf32>
    %cst_65 = arith.constant 1.000000e+00 : f32
    %262 = vector.broadcast %cst_65 : f32 to vector<8x32xf32>
    %263 = arith.addf %262, %261 : vector<8x32xf32>
    %264 = arith.divf %262, %263 : vector<8x32xf32>
    %265 = vector.extract_strided_slice %233 {offsets = [0, 32], sizes = [8, 32], strides = [1, 1]} : vector<8x128xf32> to vector<8x32xf32>
    %266 = arith.negf %265 : vector<8x32xf32>
    %267 = math.exp %266 : vector<8x32xf32>
    %cst_66 = arith.constant 1.000000e+00 : f32
    %268 = vector.broadcast %cst_66 : f32 to vector<8x32xf32>
    %269 = arith.addf %268, %267 : vector<8x32xf32>
    %270 = arith.divf %268, %269 : vector<8x32xf32>
    %271 = vector.extract_strided_slice %233 {offsets = [0, 64], sizes = [8, 32], strides = [1, 1]} : vector<8x128xf32> to vector<8x32xf32>
    %272 = math.tanh %271 : vector<8x32xf32>
    %273 = vector.extract_strided_slice %233 {offsets = [0, 96], sizes = [8, 32], strides = [1, 1]} : vector<8x128xf32> to vector<8x32xf32>
    %274 = arith.negf %273 : vector<8x32xf32>
    %275 = math.exp %274 : vector<8x32xf32>
    %cst_67 = arith.constant 1.000000e+00 : f32
    %276 = vector.broadcast %cst_67 : f32 to vector<8x32xf32>
    %277 = arith.addf %276, %275 : vector<8x32xf32>
    %278 = arith.divf %276, %277 : vector<8x32xf32>
    %279 = arith.mulf %270, %212 : vector<8x32xf32>
    %280 = arith.mulf %264, %272 : vector<8x32xf32>
    %281 = arith.addf %279, %280 : vector<8x32xf32>
    %282 = math.tanh %281 : vector<8x32xf32>
    %283 = arith.mulf %278, %282 : vector<8x32xf32>
    %284 = arith.index_cast %220 : i32 to index
    %c0_68 = arith.constant 0 : index
    %285 = vector.load %arg9[%284, %c0_68] : memref<64x32xf32, #tpu.memory_space<vmem>>, vector<8x32xf32>
    tpu.vector_store %arg9[%284, %c0_68], %258 {strides = array<i32>} : memref<64x32xf32, #tpu.memory_space<vmem>>, vector<8x32xf32>,
    %286 = arith.index_cast %223 : i32 to index
    %c0_69 = arith.constant 0 : index
    %287 = vector.load %arg10[%286, %c0_69] : memref<64x32xf32, #tpu.memory_space<vmem>>, vector<8x32xf32>
    tpu.vector_store %arg10[%286, %c0_69], %283 {strides = array<i32>} : memref<64x32xf32, #tpu.memory_space<vmem>>, vector<8x32xf32>,
    %c4_i32 = arith.constant 4 : i32
    %c8_i32_70 = arith.constant 8 : i32
    %288 = arith.muli %c4_i32, %c8_i32_70 : i32
    %289 = tpu.assume_multiple %288, 8 : i32
    %c7_i32_71 = arith.constant 7 : i32
    %290 = arith.subi %c7_i32_71, %c4_i32 : i32
    %c8_i32_72 = arith.constant 8 : i32
    %291 = arith.muli %290, %c8_i32_72 : i32
    %292 = tpu.assume_multiple %291, 8 : i32
    %293 = arith.index_cast %289 : i32 to index
    %c0_73 = arith.constant 0 : index
    %294 = vector.load %arg8[%293, %c0_73] : memref<64x256xf32, #tpu.memory_space<vmem>>, vector<8x128xf32>
    %295 = arith.truncf %258 : vector<8x32xf32> to vector<8x32xbf16>
    %cst_74 = arith.constant dense<0.000000e+00> : vector<8x128xf32>
    %296 = tpu.matmul %295, %8, %cst_74 {dimension_numbers = #tpu.dot_dimension_numbers<[1], [0], [0], [1], [0, 0, 1, 1], [], []>} : vector<8x32xbf16>, vector<32x128xbf16>, vector<8x128xf32> -> vector<8x128xf32>
    %297 = arith.addf %294, %296 : vector<8x128xf32>
    %298 = arith.index_cast %292 : i32 to index
    %c128_75 = arith.constant 128 : index
    %299 = vector.load %arg8[%298, %c128_75] : memref<64x256xf32, #tpu.memory_space<vmem>>, vector<8x128xf32>
    %300 = arith.truncf %283 : vector<8x32xf32> to vector<8x32xbf16>
    %cst_76 = arith.constant dense<0.000000e+00> : vector<8x128xf32>
    %301 = tpu.matmul %300, %10, %cst_76 {dimension_numbers = #tpu.dot_dimension_numbers<[1], [0], [0], [1], [0, 0, 1, 1], [], []>} : vector<8x32xbf16>, vector<32x128xbf16>, vector<8x128xf32> -> vector<8x128xf32>
    %302 = arith.addf %299, %301 : vector<8x128xf32>
    %303 = vector.extract_strided_slice %297 {offsets = [0, 0], sizes = [8, 32], strides = [1, 1]} : vector<8x128xf32> to vector<8x32xf32>
    %304 = arith.negf %303 : vector<8x32xf32>
    %305 = math.exp %304 : vector<8x32xf32>
    %cst_77 = arith.constant 1.000000e+00 : f32
    %306 = vector.broadcast %cst_77 : f32 to vector<8x32xf32>
    %307 = arith.addf %306, %305 : vector<8x32xf32>
    %308 = arith.divf %306, %307 : vector<8x32xf32>
    %309 = vector.extract_strided_slice %297 {offsets = [0, 32], sizes = [8, 32], strides = [1, 1]} : vector<8x128xf32> to vector<8x32xf32>
    %310 = arith.negf %309 : vector<8x32xf32>
    %311 = math.exp %310 : vector<8x32xf32>
    %cst_78 = arith.constant 1.000000e+00 : f32
    %312 = vector.broadcast %cst_78 : f32 to vector<8x32xf32>
    %313 = arith.addf %312, %311 : vector<8x32xf32>
    %314 = arith.divf %312, %313 : vector<8x32xf32>
    %315 = vector.extract_strided_slice %297 {offsets = [0, 64], sizes = [8, 32], strides = [1, 1]} : vector<8x128xf32> to vector<8x32xf32>
    %316 = math.tanh %315 : vector<8x32xf32>
    %317 = vector.extract_strided_slice %297 {offsets = [0, 96], sizes = [8, 32], strides = [1, 1]} : vector<8x128xf32> to vector<8x32xf32>
    %318 = arith.negf %317 : vector<8x32xf32>
    %319 = math.exp %318 : vector<8x32xf32>
    %cst_79 = arith.constant 1.000000e+00 : f32
    %320 = vector.broadcast %cst_79 : f32 to vector<8x32xf32>
    %321 = arith.addf %320, %319 : vector<8x32xf32>
    %322 = arith.divf %320, %321 : vector<8x32xf32>
    %323 = arith.mulf %314, %256 : vector<8x32xf32>
    %324 = arith.mulf %308, %316 : vector<8x32xf32>
    %325 = arith.addf %323, %324 : vector<8x32xf32>
    %326 = math.tanh %325 : vector<8x32xf32>
    %327 = arith.mulf %322, %326 : vector<8x32xf32>
    %328 = vector.extract_strided_slice %302 {offsets = [0, 0], sizes = [8, 32], strides = [1, 1]} : vector<8x128xf32> to vector<8x32xf32>
    %329 = arith.negf %328 : vector<8x32xf32>
    %330 = math.exp %329 : vector<8x32xf32>
    %cst_80 = arith.constant 1.000000e+00 : f32
    %331 = vector.broadcast %cst_80 : f32 to vector<8x32xf32>
    %332 = arith.addf %331, %330 : vector<8x32xf32>
    %333 = arith.divf %331, %332 : vector<8x32xf32>
    %334 = vector.extract_strided_slice %302 {offsets = [0, 32], sizes = [8, 32], strides = [1, 1]} : vector<8x128xf32> to vector<8x32xf32>
    %335 = arith.negf %334 : vector<8x32xf32>
    %336 = math.exp %335 : vector<8x32xf32>
    %cst_81 = arith.constant 1.000000e+00 : f32
    %337 = vector.broadcast %cst_81 : f32 to vector<8x32xf32>
    %338 = arith.addf %337, %336 : vector<8x32xf32>
    %339 = arith.divf %337, %338 : vector<8x32xf32>
    %340 = vector.extract_strided_slice %302 {offsets = [0, 64], sizes = [8, 32], strides = [1, 1]} : vector<8x128xf32> to vector<8x32xf32>
    %341 = math.tanh %340 : vector<8x32xf32>
    %342 = vector.extract_strided_slice %302 {offsets = [0, 96], sizes = [8, 32], strides = [1, 1]} : vector<8x128xf32> to vector<8x32xf32>
    %343 = arith.negf %342 : vector<8x32xf32>
    %344 = math.exp %343 : vector<8x32xf32>
    %cst_82 = arith.constant 1.000000e+00 : f32
    %345 = vector.broadcast %cst_82 : f32 to vector<8x32xf32>
    %346 = arith.addf %345, %344 : vector<8x32xf32>
    %347 = arith.divf %345, %346 : vector<8x32xf32>
    %348 = arith.mulf %339, %281 : vector<8x32xf32>
    %349 = arith.mulf %333, %341 : vector<8x32xf32>
    %350 = arith.addf %348, %349 : vector<8x32xf32>
    %351 = math.tanh %350 : vector<8x32xf32>
    %352 = arith.mulf %347, %351 : vector<8x32xf32>
    %353 = arith.index_cast %289 : i32 to index
    %c0_83 = arith.constant 0 : index
    %354 = vector.load %arg9[%353, %c0_83] : memref<64x32xf32, #tpu.memory_space<vmem>>, vector<8x32xf32>
    tpu.vector_store %arg9[%353, %c0_83], %327 {strides = array<i32>} : memref<64x32xf32, #tpu.memory_space<vmem>>, vector<8x32xf32>,
    %355 = arith.index_cast %292 : i32 to index
    %c0_84 = arith.constant 0 : index
    %356 = vector.load %arg10[%355, %c0_84] : memref<64x32xf32, #tpu.memory_space<vmem>>, vector<8x32xf32>
    tpu.vector_store %arg10[%355, %c0_84], %352 {strides = array<i32>} : memref<64x32xf32, #tpu.memory_space<vmem>>, vector<8x32xf32>,
    %c5_i32 = arith.constant 5 : i32
    %c8_i32_85 = arith.constant 8 : i32
    %357 = arith.muli %c5_i32, %c8_i32_85 : i32
    %358 = tpu.assume_multiple %357, 8 : i32
    %c7_i32_86 = arith.constant 7 : i32
    %359 = arith.subi %c7_i32_86, %c5_i32 : i32
    %c8_i32_87 = arith.constant 8 : i32
    %360 = arith.muli %359, %c8_i32_87 : i32
    %361 = tpu.assume_multiple %360, 8 : i32
    %362 = arith.index_cast %358 : i32 to index
    %c0_88 = arith.constant 0 : index
    %363 = vector.load %arg8[%362, %c0_88] : memref<64x256xf32, #tpu.memory_space<vmem>>, vector<8x128xf32>
    %364 = arith.truncf %327 : vector<8x32xf32> to vector<8x32xbf16>
    %cst_89 = arith.constant dense<0.000000e+00> : vector<8x128xf32>
    %365 = tpu.matmul %364, %8, %cst_89 {dimension_numbers = #tpu.dot_dimension_numbers<[1], [0], [0], [1], [0, 0, 1, 1], [], []>} : vector<8x32xbf16>, vector<32x128xbf16>, vector<8x128xf32> -> vector<8x128xf32>
    %366 = arith.addf %363, %365 : vector<8x128xf32>
    %367 = arith.index_cast %361 : i32 to index
    %c128_90 = arith.constant 128 : index
    %368 = vector.load %arg8[%367, %c128_90] : memref<64x256xf32, #tpu.memory_space<vmem>>, vector<8x128xf32>
    %369 = arith.truncf %352 : vector<8x32xf32> to vector<8x32xbf16>
    %cst_91 = arith.constant dense<0.000000e+00> : vector<8x128xf32>
    %370 = tpu.matmul %369, %10, %cst_91 {dimension_numbers = #tpu.dot_dimension_numbers<[1], [0], [0], [1], [0, 0, 1, 1], [], []>} : vector<8x32xbf16>, vector<32x128xbf16>, vector<8x128xf32> -> vector<8x128xf32>
    %371 = arith.addf %368, %370 : vector<8x128xf32>
    %372 = vector.extract_strided_slice %366 {offsets = [0, 0], sizes = [8, 32], strides = [1, 1]} : vector<8x128xf32> to vector<8x32xf32>
    %373 = arith.negf %372 : vector<8x32xf32>
    %374 = math.exp %373 : vector<8x32xf32>
    %cst_92 = arith.constant 1.000000e+00 : f32
    %375 = vector.broadcast %cst_92 : f32 to vector<8x32xf32>
    %376 = arith.addf %375, %374 : vector<8x32xf32>
    %377 = arith.divf %375, %376 : vector<8x32xf32>
    %378 = vector.extract_strided_slice %366 {offsets = [0, 32], sizes = [8, 32], strides = [1, 1]} : vector<8x128xf32> to vector<8x32xf32>
    %379 = arith.negf %378 : vector<8x32xf32>
    %380 = math.exp %379 : vector<8x32xf32>
    %cst_93 = arith.constant 1.000000e+00 : f32
    %381 = vector.broadcast %cst_93 : f32 to vector<8x32xf32>
    %382 = arith.addf %381, %380 : vector<8x32xf32>
    %383 = arith.divf %381, %382 : vector<8x32xf32>
    %384 = vector.extract_strided_slice %366 {offsets = [0, 64], sizes = [8, 32], strides = [1, 1]} : vector<8x128xf32> to vector<8x32xf32>
    %385 = math.tanh %384 : vector<8x32xf32>
    %386 = vector.extract_strided_slice %366 {offsets = [0, 96], sizes = [8, 32], strides = [1, 1]} : vector<8x128xf32> to vector<8x32xf32>
    %387 = arith.negf %386 : vector<8x32xf32>
    %388 = math.exp %387 : vector<8x32xf32>
    %cst_94 = arith.constant 1.000000e+00 : f32
    %389 = vector.broadcast %cst_94 : f32 to vector<8x32xf32>
    %390 = arith.addf %389, %388 : vector<8x32xf32>
    %391 = arith.divf %389, %390 : vector<8x32xf32>
    %392 = arith.mulf %383, %325 : vector<8x32xf32>
    %393 = arith.mulf %377, %385 : vector<8x32xf32>
    %394 = arith.addf %392, %393 : vector<8x32xf32>
    %395 = math.tanh %394 : vector<8x32xf32>
    %396 = arith.mulf %391, %395 : vector<8x32xf32>
    %397 = vector.extract_strided_slice %371 {offsets = [0, 0], sizes = [8, 32], strides = [1, 1]} : vector<8x128xf32> to vector<8x32xf32>
    %398 = arith.negf %397 : vector<8x32xf32>
    %399 = math.exp %398 : vector<8x32xf32>
    %cst_95 = arith.constant 1.000000e+00 : f32
    %400 = vector.broadcast %cst_95 : f32 to vector<8x32xf32>
    %401 = arith.addf %400, %399 : vector<8x32xf32>
    %402 = arith.divf %400, %401 : vector<8x32xf32>
    %403 = vector.extract_strided_slice %371 {offsets = [0, 32], sizes = [8, 32], strides = [1, 1]} : vector<8x128xf32> to vector<8x32xf32>
    %404 = arith.negf %403 : vector<8x32xf32>
    %405 = math.exp %404 : vector<8x32xf32>
    %cst_96 = arith.constant 1.000000e+00 : f32
    %406 = vector.broadcast %cst_96 : f32 to vector<8x32xf32>
    %407 = arith.addf %406, %405 : vector<8x32xf32>
    %408 = arith.divf %406, %407 : vector<8x32xf32>
    %409 = vector.extract_strided_slice %371 {offsets = [0, 64], sizes = [8, 32], strides = [1, 1]} : vector<8x128xf32> to vector<8x32xf32>
    %410 = math.tanh %409 : vector<8x32xf32>
    %411 = vector.extract_strided_slice %371 {offsets = [0, 96], sizes = [8, 32], strides = [1, 1]} : vector<8x128xf32> to vector<8x32xf32>
    %412 = arith.negf %411 : vector<8x32xf32>
    %413 = math.exp %412 : vector<8x32xf32>
    %cst_97 = arith.constant 1.000000e+00 : f32
    %414 = vector.broadcast %cst_97 : f32 to vector<8x32xf32>
    %415 = arith.addf %414, %413 : vector<8x32xf32>
    %416 = arith.divf %414, %415 : vector<8x32xf32>
    %417 = arith.mulf %408, %350 : vector<8x32xf32>
    %418 = arith.mulf %402, %410 : vector<8x32xf32>
    %419 = arith.addf %417, %418 : vector<8x32xf32>
    %420 = math.tanh %419 : vector<8x32xf32>
    %421 = arith.mulf %416, %420 : vector<8x32xf32>
    %422 = arith.index_cast %358 : i32 to index
    %c0_98 = arith.constant 0 : index
    %423 = vector.load %arg9[%422, %c0_98] : memref<64x32xf32, #tpu.memory_space<vmem>>, vector<8x32xf32>
    tpu.vector_store %arg9[%422, %c0_98], %396 {strides = array<i32>} : memref<64x32xf32, #tpu.memory_space<vmem>>, vector<8x32xf32>,
    %424 = arith.index_cast %361 : i32 to index
    %c0_99 = arith.constant 0 : index
    %425 = vector.load %arg10[%424, %c0_99] : memref<64x32xf32, #tpu.memory_space<vmem>>, vector<8x32xf32>
    tpu.vector_store %arg10[%424, %c0_99], %421 {strides = array<i32>} : memref<64x32xf32, #tpu.memory_space<vmem>>, vector<8x32xf32>,
    %c6_i32 = arith.constant 6 : i32
    %c8_i32_100 = arith.constant 8 : i32
    %426 = arith.muli %c6_i32, %c8_i32_100 : i32
    %427 = tpu.assume_multiple %426, 8 : i32
    %c7_i32_101 = arith.constant 7 : i32
    %428 = arith.subi %c7_i32_101, %c6_i32 : i32
    %c8_i32_102 = arith.constant 8 : i32
    %429 = arith.muli %428, %c8_i32_102 : i32
    %430 = tpu.assume_multiple %429, 8 : i32
    %431 = arith.index_cast %427 : i32 to index
    %c0_103 = arith.constant 0 : index
    %432 = vector.load %arg8[%431, %c0_103] : memref<64x256xf32, #tpu.memory_space<vmem>>, vector<8x128xf32>
    %433 = arith.truncf %396 : vector<8x32xf32> to vector<8x32xbf16>
    %cst_104 = arith.constant dense<0.000000e+00> : vector<8x128xf32>
    %434 = tpu.matmul %433, %8, %cst_104 {dimension_numbers = #tpu.dot_dimension_numbers<[1], [0], [0], [1], [0, 0, 1, 1], [], []>} : vector<8x32xbf16>, vector<32x128xbf16>, vector<8x128xf32> -> vector<8x128xf32>
    %435 = arith.addf %432, %434 : vector<8x128xf32>
    %436 = arith.index_cast %430 : i32 to index
    %c128_105 = arith.constant 128 : index
    %437 = vector.load %arg8[%436, %c128_105] : memref<64x256xf32, #tpu.memory_space<vmem>>, vector<8x128xf32>
    %438 = arith.truncf %421 : vector<8x32xf32> to vector<8x32xbf16>
    %cst_106 = arith.constant dense<0.000000e+00> : vector<8x128xf32>
    %439 = tpu.matmul %438, %10, %cst_106 {dimension_numbers = #tpu.dot_dimension_numbers<[1], [0], [0], [1], [0, 0, 1, 1], [], []>} : vector<8x32xbf16>, vector<32x128xbf16>, vector<8x128xf32> -> vector<8x128xf32>
    %440 = arith.addf %437, %439 : vector<8x128xf32>
    %441 = vector.extract_strided_slice %435 {offsets = [0, 0], sizes = [8, 32], strides = [1, 1]} : vector<8x128xf32> to vector<8x32xf32>
    %442 = arith.negf %441 : vector<8x32xf32>
    %443 = math.exp %442 : vector<8x32xf32>
    %cst_107 = arith.constant 1.000000e+00 : f32
    %444 = vector.broadcast %cst_107 : f32 to vector<8x32xf32>
    %445 = arith.addf %444, %443 : vector<8x32xf32>
    %446 = arith.divf %444, %445 : vector<8x32xf32>
    %447 = vector.extract_strided_slice %435 {offsets = [0, 32], sizes = [8, 32], strides = [1, 1]} : vector<8x128xf32> to vector<8x32xf32>
    %448 = arith.negf %447 : vector<8x32xf32>
    %449 = math.exp %448 : vector<8x32xf32>
    %cst_108 = arith.constant 1.000000e+00 : f32
    %450 = vector.broadcast %cst_108 : f32 to vector<8x32xf32>
    %451 = arith.addf %450, %449 : vector<8x32xf32>
    %452 = arith.divf %450, %451 : vector<8x32xf32>
    %453 = vector.extract_strided_slice %435 {offsets = [0, 64], sizes = [8, 32], strides = [1, 1]} : vector<8x128xf32> to vector<8x32xf32>
    %454 = math.tanh %453 : vector<8x32xf32>
    %455 = vector.extract_strided_slice %435 {offsets = [0, 96], sizes = [8, 32], strides = [1, 1]} : vector<8x128xf32> to vector<8x32xf32>
    %456 = arith.negf %455 : vector<8x32xf32>
    %457 = math.exp %456 : vector<8x32xf32>
    %cst_109 = arith.constant 1.000000e+00 : f32
    %458 = vector.broadcast %cst_109 : f32 to vector<8x32xf32>
    %459 = arith.addf %458, %457 : vector<8x32xf32>
    %460 = arith.divf %458, %459 : vector<8x32xf32>
    %461 = arith.mulf %452, %394 : vector<8x32xf32>
    %462 = arith.mulf %446, %454 : vector<8x32xf32>
    %463 = arith.addf %461, %462 : vector<8x32xf32>
    %464 = math.tanh %463 : vector<8x32xf32>
    %465 = arith.mulf %460, %464 : vector<8x32xf32>
    %466 = vector.extract_strided_slice %440 {offsets = [0, 0], sizes = [8, 32], strides = [1, 1]} : vector<8x128xf32> to vector<8x32xf32>
    %467 = arith.negf %466 : vector<8x32xf32>
    %468 = math.exp %467 : vector<8x32xf32>
    %cst_110 = arith.constant 1.000000e+00 : f32
    %469 = vector.broadcast %cst_110 : f32 to vector<8x32xf32>
    %470 = arith.addf %469, %468 : vector<8x32xf32>
    %471 = arith.divf %469, %470 : vector<8x32xf32>
    %472 = vector.extract_strided_slice %440 {offsets = [0, 32], sizes = [8, 32], strides = [1, 1]} : vector<8x128xf32> to vector<8x32xf32>
    %473 = arith.negf %472 : vector<8x32xf32>
    %474 = math.exp %473 : vector<8x32xf32>
    %cst_111 = arith.constant 1.000000e+00 : f32
    %475 = vector.broadcast %cst_111 : f32 to vector<8x32xf32>
    %476 = arith.addf %475, %474 : vector<8x32xf32>
    %477 = arith.divf %475, %476 : vector<8x32xf32>
    %478 = vector.extract_strided_slice %440 {offsets = [0, 64], sizes = [8, 32], strides = [1, 1]} : vector<8x128xf32> to vector<8x32xf32>
    %479 = math.tanh %478 : vector<8x32xf32>
    %480 = vector.extract_strided_slice %440 {offsets = [0, 96], sizes = [8, 32], strides = [1, 1]} : vector<8x128xf32> to vector<8x32xf32>
    %481 = arith.negf %480 : vector<8x32xf32>
    %482 = math.exp %481 : vector<8x32xf32>
    %cst_112 = arith.constant 1.000000e+00 : f32
    %483 = vector.broadcast %cst_112 : f32 to vector<8x32xf32>
    %484 = arith.addf %483, %482 : vector<8x32xf32>
    %485 = arith.divf %483, %484 : vector<8x32xf32>
    %486 = arith.mulf %477, %419 : vector<8x32xf32>
    %487 = arith.mulf %471, %479 : vector<8x32xf32>
    %488 = arith.addf %486, %487 : vector<8x32xf32>
    %489 = math.tanh %488 : vector<8x32xf32>
    %490 = arith.mulf %485, %489 : vector<8x32xf32>
    %491 = arith.index_cast %427 : i32 to index
    %c0_113 = arith.constant 0 : index
    %492 = vector.load %arg9[%491, %c0_113] : memref<64x32xf32, #tpu.memory_space<vmem>>, vector<8x32xf32>
    tpu.vector_store %arg9[%491, %c0_113], %465 {strides = array<i32>} : memref<64x32xf32, #tpu.memory_space<vmem>>, vector<8x32xf32>,
    %493 = arith.index_cast %430 : i32 to index
    %c0_114 = arith.constant 0 : index
    %494 = vector.load %arg10[%493, %c0_114] : memref<64x32xf32, #tpu.memory_space<vmem>>, vector<8x32xf32>
    tpu.vector_store %arg10[%493, %c0_114], %490 {strides = array<i32>} : memref<64x32xf32, #tpu.memory_space<vmem>>, vector<8x32xf32>,
    %c7_i32_115 = arith.constant 7 : i32
    %c8_i32_116 = arith.constant 8 : i32
    %495 = arith.muli %c7_i32_115, %c8_i32_116 : i32
    %496 = tpu.assume_multiple %495, 8 : i32
    %c7_i32_117 = arith.constant 7 : i32
    %497 = arith.subi %c7_i32_117, %c7_i32_115 : i32
    %c8_i32_118 = arith.constant 8 : i32
    %498 = arith.muli %497, %c8_i32_118 : i32
    %499 = tpu.assume_multiple %498, 8 : i32
    %500 = arith.index_cast %496 : i32 to index
    %c0_119 = arith.constant 0 : index
    %501 = vector.load %arg8[%500, %c0_119] : memref<64x256xf32, #tpu.memory_space<vmem>>, vector<8x128xf32>
    %502 = arith.truncf %465 : vector<8x32xf32> to vector<8x32xbf16>
    %cst_120 = arith.constant dense<0.000000e+00> : vector<8x128xf32>
    %503 = tpu.matmul %502, %8, %cst_120 {dimension_numbers = #tpu.dot_dimension_numbers<[1], [0], [0], [1], [0, 0, 1, 1], [], []>} : vector<8x32xbf16>, vector<32x128xbf16>, vector<8x128xf32> -> vector<8x128xf32>
    %504 = arith.addf %501, %503 : vector<8x128xf32>
    %505 = arith.index_cast %499 : i32 to index
    %c128_121 = arith.constant 128 : index
    %506 = vector.load %arg8[%505, %c128_121] : memref<64x256xf32, #tpu.memory_space<vmem>>, vector<8x128xf32>
    %507 = arith.truncf %490 : vector<8x32xf32> to vector<8x32xbf16>
    %cst_122 = arith.constant dense<0.000000e+00> : vector<8x128xf32>
    %508 = tpu.matmul %507, %10, %cst_122 {dimension_numbers = #tpu.dot_dimension_numbers<[1], [0], [0], [1], [0, 0, 1, 1], [], []>} : vector<8x32xbf16>, vector<32x128xbf16>, vector<8x128xf32> -> vector<8x128xf32>
    %509 = arith.addf %506, %508 : vector<8x128xf32>
    %510 = vector.extract_strided_slice %504 {offsets = [0, 0], sizes = [8, 32], strides = [1, 1]} : vector<8x128xf32> to vector<8x32xf32>
    %511 = arith.negf %510 : vector<8x32xf32>
    %512 = math.exp %511 : vector<8x32xf32>
    %cst_123 = arith.constant 1.000000e+00 : f32
    %513 = vector.broadcast %cst_123 : f32 to vector<8x32xf32>
    %514 = arith.addf %513, %512 : vector<8x32xf32>
    %515 = arith.divf %513, %514 : vector<8x32xf32>
    %516 = vector.extract_strided_slice %504 {offsets = [0, 32], sizes = [8, 32], strides = [1, 1]} : vector<8x128xf32> to vector<8x32xf32>
    %517 = arith.negf %516 : vector<8x32xf32>
    %518 = math.exp %517 : vector<8x32xf32>
    %cst_124 = arith.constant 1.000000e+00 : f32
    %519 = vector.broadcast %cst_124 : f32 to vector<8x32xf32>
    %520 = arith.addf %519, %518 : vector<8x32xf32>
    %521 = arith.divf %519, %520 : vector<8x32xf32>
    %522 = vector.extract_strided_slice %504 {offsets = [0, 64], sizes = [8, 32], strides = [1, 1]} : vector<8x128xf32> to vector<8x32xf32>
    %523 = math.tanh %522 : vector<8x32xf32>
    %524 = vector.extract_strided_slice %504 {offsets = [0, 96], sizes = [8, 32], strides = [1, 1]} : vector<8x128xf32> to vector<8x32xf32>
    %525 = arith.negf %524 : vector<8x32xf32>
    %526 = math.exp %525 : vector<8x32xf32>
    %cst_125 = arith.constant 1.000000e+00 : f32
    %527 = vector.broadcast %cst_125 : f32 to vector<8x32xf32>
    %528 = arith.addf %527, %526 : vector<8x32xf32>
    %529 = arith.divf %527, %528 : vector<8x32xf32>
    %530 = arith.mulf %521, %463 : vector<8x32xf32>
    %531 = arith.mulf %515, %523 : vector<8x32xf32>
    %532 = arith.addf %530, %531 : vector<8x32xf32>
    %533 = math.tanh %532 : vector<8x32xf32>
    %534 = arith.mulf %529, %533 : vector<8x32xf32>
    %535 = vector.extract_strided_slice %509 {offsets = [0, 0], sizes = [8, 32], strides = [1, 1]} : vector<8x128xf32> to vector<8x32xf32>
    %536 = arith.negf %535 : vector<8x32xf32>
    %537 = math.exp %536 : vector<8x32xf32>
    %cst_126 = arith.constant 1.000000e+00 : f32
    %538 = vector.broadcast %cst_126 : f32 to vector<8x32xf32>
    %539 = arith.addf %538, %537 : vector<8x32xf32>
    %540 = arith.divf %538, %539 : vector<8x32xf32>
    %541 = vector.extract_strided_slice %509 {offsets = [0, 32], sizes = [8, 32], strides = [1, 1]} : vector<8x128xf32> to vector<8x32xf32>
    %542 = arith.negf %541 : vector<8x32xf32>
    %543 = math.exp %542 : vector<8x32xf32>
    %cst_127 = arith.constant 1.000000e+00 : f32
    %544 = vector.broadcast %cst_127 : f32 to vector<8x32xf32>
    %545 = arith.addf %544, %543 : vector<8x32xf32>
    %546 = arith.divf %544, %545 : vector<8x32xf32>
    %547 = vector.extract_strided_slice %509 {offsets = [0, 64], sizes = [8, 32], strides = [1, 1]} : vector<8x128xf32> to vector<8x32xf32>
    %548 = math.tanh %547 : vector<8x32xf32>
    %549 = vector.extract_strided_slice %509 {offsets = [0, 96], sizes = [8, 32], strides = [1, 1]} : vector<8x128xf32> to vector<8x32xf32>
    %550 = arith.negf %549 : vector<8x32xf32>
    %551 = math.exp %550 : vector<8x32xf32>
    %cst_128 = arith.constant 1.000000e+00 : f32
    %552 = vector.broadcast %cst_128 : f32 to vector<8x32xf32>
    %553 = arith.addf %552, %551 : vector<8x32xf32>
    %554 = arith.divf %552, %553 : vector<8x32xf32>
    %555 = arith.mulf %546, %488 : vector<8x32xf32>
    %556 = arith.mulf %540, %548 : vector<8x32xf32>
    %557 = arith.addf %555, %556 : vector<8x32xf32>
    %558 = math.tanh %557 : vector<8x32xf32>
    %559 = arith.mulf %554, %558 : vector<8x32xf32>
    %560 = arith.index_cast %496 : i32 to index
    %c0_129 = arith.constant 0 : index
    %561 = vector.load %arg9[%560, %c0_129] : memref<64x32xf32, #tpu.memory_space<vmem>>, vector<8x32xf32>
    tpu.vector_store %arg9[%560, %c0_129], %534 {strides = array<i32>} : memref<64x32xf32, #tpu.memory_space<vmem>>, vector<8x32xf32>,
    %562 = arith.index_cast %499 : i32 to index
    %c0_130 = arith.constant 0 : index
    %563 = vector.load %arg10[%562, %c0_130] : memref<64x32xf32, #tpu.memory_space<vmem>>, vector<8x32xf32>
    tpu.vector_store %arg10[%562, %c0_130], %559 {strides = array<i32>} : memref<64x32xf32, #tpu.memory_space<vmem>>, vector<8x32xf32>,
    %c8_i32_131 = arith.constant 8 : i32
    %c0_132 = arith.constant 0 : index
    %c0_133 = arith.constant 0 : index
    %564 = vector.load %arg9[%c0_132, %c0_133] : memref<64x32xf32, #tpu.memory_space<vmem>>, vector<64x32xf32>
    %565 = arith.truncf %564 : vector<64x32xf32> to vector<64x32xbf16>
    %c0_134 = arith.constant 0 : index
    %c0_135 = arith.constant 0 : index
    %c0_136 = arith.constant 0 : index
    %566 = vector.load %arg5[%c0_134, %c0_135, %c0_136] : memref<2x32x128xbf16, #tpu.memory_space<vmem>>, vector<1x32x128xbf16>
    %567 = vector.shape_cast %566 : vector<1x32x128xbf16> to vector<32x128xbf16>
    %cst_137 = arith.constant dense<0.000000e+00> : vector<64x128xf32>
    %568 = tpu.matmul %565, %567, %cst_137 {dimension_numbers = #tpu.dot_dimension_numbers<[1], [0], [0], [1], [0, 0, 1, 1], [], []>} : vector<64x32xbf16>, vector<32x128xbf16>, vector<64x128xf32> -> vector<64x128xf32>
    %c0_138 = arith.constant 0 : index
    %c0_139 = arith.constant 0 : index
    %569 = vector.load %arg10[%c0_138, %c0_139] : memref<64x32xf32, #tpu.memory_space<vmem>>, vector<64x32xf32>
    %570 = arith.truncf %569 : vector<64x32xf32> to vector<64x32xbf16>
    %c1_140 = arith.constant 1 : index
    %c0_141 = arith.constant 0 : index
    %c0_142 = arith.constant 0 : index
    %571 = vector.load %arg5[%c1_140, %c0_141, %c0_142] : memref<2x32x128xbf16, #tpu.memory_space<vmem>>, vector<1x32x128xbf16>
    %572 = vector.shape_cast %571 : vector<1x32x128xbf16> to vector<32x128xbf16>
    %cst_143 = arith.constant dense<0.000000e+00> : vector<64x128xf32>
    %573 = tpu.matmul %570, %572, %cst_143 {dimension_numbers = #tpu.dot_dimension_numbers<[1], [0], [0], [1], [0, 0, 1, 1], [], []>} : vector<64x32xbf16>, vector<32x128xbf16>, vector<64x128xf32> -> vector<64x128xf32>
    %574 = arith.addf %568, %573 : vector<64x128xf32>
    %c0_144 = arith.constant 0 : index
    %c0_145 = arith.constant 0 : index
    %575 = vector.load %arg6[%c0_144, %c0_145] : memref<1x128xf32, #tpu.memory_space<vmem>>, vector<1x128xf32>
    %576 = vector.broadcast %575 : vector<1x128xf32> to vector<64x128xf32>
    %577 = arith.addf %574, %576 : vector<64x128xf32>
    %c0_146 = arith.constant 0 : index
    %c0_147 = arith.constant 0 : index
    %578 = vector.load %arg7[%c0_146, %c0_147] : memref<64x128xf32, #tpu.memory_space<vmem>>, vector<64x128xf32>
    tpu.vector_store %arg7[%c0_146, %c0_147], %577 {strides = array<i32>} : memref<64x128xf32, #tpu.memory_space<vmem>>, vector<64x128xf32>,
    return
  }
  func.func @transform_0(%arg0: i32) -> (i32, i32) {
    %c0_i32 = arith.constant 0 : i32
    %c0_i32_0 = arith.constant 0 : i32
    %c0_i32_1 = arith.constant 0 : i32
    return %c0_i32, %c0_i32_0 : i32, i32
  }
  func.func @transform_1(%arg0: i32) -> (i32, i32) {
    %c0_i32 = arith.constant 0 : i32
    %c0_i32_0 = arith.constant 0 : i32
    %c0_i32_1 = arith.constant 0 : i32
    return %c0_i32, %c0_i32_0 : i32, i32
  }
  func.func @transform_2(%arg0: i32) -> (i32, i32) {
    %c0_i32 = arith.constant 0 : i32
    %c0_i32_0 = arith.constant 0 : i32
    %c0_i32_1 = arith.constant 0 : i32
    return %c0_i32, %c0_i32_0 : i32, i32
  }
  func.func @transform_3(%arg0: i32) -> (i32, i32, i32) {
    %c0_i32 = arith.constant 0 : i32
    %c0_i32_0 = arith.constant 0 : i32
    %c0_i32_1 = arith.constant 0 : i32
    %c0_i32_2 = arith.constant 0 : i32
    return %c0_i32, %c0_i32_0, %c0_i32_1 : i32, i32, i32
  }
  func.func @transform_4(%arg0: i32) -> (i32, i32, i32) {
    %c0_i32 = arith.constant 0 : i32
    %c0_i32_0 = arith.constant 0 : i32
    %c0_i32_1 = arith.constant 0 : i32
    %c0_i32_2 = arith.constant 0 : i32
    return %c0_i32, %c0_i32_0, %c0_i32_1 : i32, i32, i32
  }
  func.func @transform_5(%arg0: i32) -> (i32, i32) {
    %c0_i32 = arith.constant 0 : i32
    %c0_i32_0 = arith.constant 0 : i32
    %c0_i32_1 = arith.constant 0 : i32
    return %c0_i32, %c0_i32_0 : i32, i32
  }
  func.func @transform_6(%arg0: i32) -> (i32, i32) {
    %c0_i32 = arith.constant 0 : i32
    %c0_i32_0 = arith.constant 0 : i32
    %c0_i32_1 = arith.constant 0 : i32
    return %c0_i32, %c0_i32_0 : i32, i32
  }
}

</mosaic_0001>

<bundles_post_ra>
// kernel: tpu_custom_call.1
= control target key start
LH: loop header
LB: loop body
LE: loop exit
PB: predicated region body
PF: predicated region fallthrough
CT: control target
= control target key end

     0   :  { %11 = vsyncpa [#allocation6], 0  ;;  %s2758_s0 = inlined_call_operand.vmem [shape: bf16[64,32], index: 0, kind: input, shape index: {}]   ;;  %s2759_s1 = inlined_call_operand.vmem [shape: bf16[32,256], index: 1, kind: input, shape index: {}]   ;;  %s2760_s2 = inlined_call_operand.vmem [shape: f32[1,256], index: 2, kind: input, shape index: {}]   ;;  %s2761_s3 = inlined_call_operand.hbm [shape: bf16[2,32,128], index: 3, kind: input, shape index: {}]   ;;  %s2762_s4 = inlined_call_operand.hbm [shape: bf16[2,32,128], index: 4, kind: input, shape index: {}]   ;;  %s2763_s5 = inlined_call_operand.vmem [shape: f32[1,128], index: 5, kind: input, shape index: {}]   ;;  %s2764_s6 = inlined_call_operand.hbm [shape: f32[64,128], index: 6, kind: output, shape index: {}]  }
   0x1   :  { %12 = vsyncpa [#allocation9], 0 }
   0x2   :  { %13 = vsyncpa [#allocation7], 0  ;;  %s2280_s21 = smov [#allocation5]  }
   0x3   :  { %s25_s22 = sshll.u32 %s2280_s21, 4  ;;  %s26_s22 = int_to_ptr.vmem [resolvable:$true] %s25_s22 }
   0x4   :  { %s2222_s23 = scalar_lea.vmem %s26_s22, 512  ;;  %p2227_p1 = scmp.lt.s32.totalorder %s26_s22, %s26_s22 }
   0x5   :  { %p2223_p0 = scmp.ne.s32.totalorder %s26_s22, %s2222_s23  ;;  %p2228_p2 = scmp.lt.s32.totalorder %s2222_s23, %s2222_s23 }
   0x7   :  { %p2229_p3 = por %p2228_p2, %p2227_p1 }
   0x9   :  { %p2230_p4 = pnand %p2229_p3, %p2223_p0 }
   0xb   :  { %2233 = shalt.err (!%p2230_p4)
}
   0xc   :  { %s2281_s24 = smov 64   ;;  %s2282_s25 = smov 4  }
   0xd   :  { %31 = dma.hbm_to_vmem [thread:$0]  %s2761_s3, 512, %s26_s22, [#allocation6], %s2281_s24, %s2281_s24, %s2282_s25  }
   0xe   :  { %s2283_s28 = smov [#allocation8]  }
   0xf   :  { %s37_s29 = sshll.u32 %s2283_s28, 4  ;;  %s38_s29 = int_to_ptr.vmem [resolvable:$true] %s37_s29 }
  0x10   :  { %s2242_s30 = scalar_lea.vmem %s38_s29, 512  ;;  %p2247_p6 = scmp.lt.s32.totalorder %s38_s29, %s38_s29 }
  0x11   :  { %p2243_p5 = scmp.ne.s32.totalorder %s38_s29, %s2242_s30  ;;  %p2248_p7 = scmp.lt.s32.totalorder %s2242_s30, %s2242_s30 }
  0x13   :  { %p2249_p8 = por %p2248_p7, %p2247_p6 }
  0x15   :  { %p2250_p9 = pnand %p2249_p8, %p2243_p5 }
  0x17   :  { %2253 = shalt.err (!%p2250_p9)
}
  0x18   :  { %43 = dma.hbm_to_vmem [thread:$0]  %s2762_s4, 512, %s38_s29, [#allocation9], %s2281_s24, %s2281_s24, %s2282_s25  }
  0x19   :  { %2274 = dma.done.wait [#allocation6], 512  }
  0x1a   :  { %2275 = vsyncadd [#allocation6], 4294966784 }
  0x1b   :  { %2276 = dma.done.wait [#allocation9], 512  }
  0x1c   :  { %2277 = vsyncadd [#allocation9], 4294966784  ;;  %v2284_v0 = vmov 0.0   ;;  %v2285_v1 = vmov 0   ;;  %vm2286_vm0 = vmmov 0   ;;  %v2345_v4 = vld [vmem:[#allocation5 + $0x8] sm:$0xff]   ;;  %v67_v14 = vlaneseq }
  0x1d   :  { %1905 = vmatprep.subr.bf16.mxu1 %v2284_v0  ;;  %162 = vmatprep.mubr.bf16.mxu0 %v2285_v1  ;;  %v2068_v2 = vld [vmem:[%s2759_s1 + $0x14] ss:$8 sps:$4 sm:$0xff]   ;;  %v2070_v3 = vld [vmem:[%s2759_s1 + $0x10] ss:$8 sps:$4 sm:$0xff]   ;;  %v2072_v5 = vld [vmem:[%s2759_s1 + $0x4] ss:$8 sps:$4 sm:$0xff]  }
  0x1e   :  { %1909 = vmatprep.mubr.msk.bf16.mxu1 %vm2286_vm0, %v2284_v0  ;;  %142 = vmatprep.subr.bf16.mxu0 %v2068_v2  ;;  %v2074_v6 = vld [vmem:[%s2759_s1] ss:$8 sps:$4 sm:$0xff]   ;;  %vm117_vm1 = vcmask 261120   ;;  %v2361_v9 = vld [vmem:[#allocation5 + $0x18] sm:$0xff]   ;;  %v2366_v10 = vld [vmem:[#allocation5 + $0x10] sm:$0xff]   ;;  %v68_v15 = vshrl.u32 %v67_v14, 7 }
  0x1f   :  { %143 = vmatpush1.bf16.msra.mxu0 %v2070_v3  ;;  %1906 = vmatpush3.bf16.msra.mxu1 %v2345_v4  ;;  %v2354_v7 = vld [vmem:[#allocation5] sm:$0xff]   ;;  %v2077_v11 = vld [vmem:[%s2758_s0 + $0x8] sm:$0xff]   ;;  %v2078_v12 = vld [vmem:[%s2758_s0 + $0x10] sm:$0xff]  }
  0x20   :  { %144 = vmatprep.subr.bf16.mxu0 %v2072_v5  ;;  %1907 = vmatprep.subr.bf16.mxu1 %v2284_v0  ;;  %v2076_v8 = vld [vmem:[%s2758_s0] sm:$0xff]   ;;  %v2081_v13 = vld [vmem:[%s2758_s0 + $0x18] sm:$0xff]   ;;  %v69_v16 = vsub.s32 0, %v68_v15  ;;  %v73_v18 = vsub.s32 1, %v68_v15  ;;  %s2287_s0 = smov 32  }
  0x21   :  { %v65_v17 = vld [vmem:[%s2760_s2] sm:$0x3] }
  0x22   :  { %v70_v19 = vrot.slane %v65_v17, %v69_v16  ;;  %v74_v20 = vrot.slane %v65_v17, %v73_v18 }
  0x23   :  { %145 = vmatpush1.bf16.msra.mxu0 %v2074_v6  ;;  %1908 = vmatpush3.bf16.msra.mxu1 %v2354_v7 }
  0x24   :  { %1937 = vmatprep.subr.bf16.mxu0 %v2284_v0  ;;  %1913 = vmatprep.subr.bf16.mxu1 %v2284_v0 }
  0x26   :  { %1794 = vmatmul.mubr.msk.bf16.vlgmr.msra.gmra.mxu0 %vm117_vm1, %v2076_v8  ;;  %1910 = vmatmul.mubr.bf16.vlgmr.msra.gmra.mxu1 %v2285_v1 }
  0x27   :  { %172 = vmatprep.mubr.bf16.mxu0 %v2285_v1  ;;  %1914 = vmatpush3.bf16.msra.mxu1 %v2361_v9 }
  0x28   :  { %1917 = vmatprep.mubr.msk.bf16.mxu1 %vm2286_vm0, %v2284_v0  ;;  %1915 = vmatprep.subr.bf16.mxu1 %v2284_v0 }
  0x29   :  { %1938 = vmatpush3.bf16.msra.mxu0 %v2345_v4 }
  0x2a   :  { %1939 = vmatprep.subr.bf16.mxu0 %v2284_v0 }
  0x2b   :  { %1916 = vmatpush3.bf16.msra.mxu1 %v2366_v10 }
  0x2c   :  { %1921 = vmatprep.subr.bf16.mxu1 %v2284_v0 }
  0x2d   :  { %1940 = vmatpush3.bf16.msra.mxu0 %v2354_v7 }
  0x2e   :  { %1795 = vmatmul.mubr.msk.bf16.gmra.mxu0 %vm117_vm1, %v2077_v11  ;;  %1953 = vmatprep.subr.bf16.mxu0 %v2284_v0 }
  0x2f   :  { %182 = vmatprep.mubr.bf16.mxu0 %v2285_v1  ;;  %1918 = vmatmul.mubr.bf16.vlgmr.msra.gmra.mxu1 %v2285_v1 }
  0x30   :  { %1922 = vmatpush3.bf16.msra.mxu1 %v2345_v4  ;;  %1925 = vmatprep.mubr.msk.bf16.mxu1 %vm2286_vm0, %v2284_v0 }
  0x31   :  { %1923 = vmatprep.subr.bf16.mxu1 %v2284_v0 }
  0x34   :  { %1924 = vmatpush3.bf16.msra.mxu1 %v2354_v7 }
  0x35   :  { %1929 = vmatprep.subr.bf16.mxu1 %v2284_v0 }
  0x36   :  { %1796 = vmatmul.mubr.msk.bf16.gmra.mxu0 %vm117_vm1, %v2078_v12 }
  0x37   :  { %192 = vmatprep.mubr.bf16.mxu0 %v2285_v1 }
  0x3e   :  { %1797 = vmatmul.mubr.msk.bf16.gmra.mxu0 %vm117_vm1, %v2081_v13 }
  0x3f   :  { %1941 = vmatprep.mubr.msk.bf16.mxu0 %vm2286_vm0, %v2284_v0 }
  0xe6   :  { %v164_v21 = vpop.f32.mrf.mxu0  ;;  %v281_v23 = vpop.f32.mrf.mxu1 }
  0xe7   :  { %v165_v22 = vadd.f32 %v164_v21, %v70_v19 }
  0xe8   :  { %v166_v24 = vpop.f32.mrf.mxu0  ;;  %v1911_v27 = vpop.f32.mrf.mxu1 }
  0xe9   :  { %v2401_v25 = vadd.f32 %v166_v24, %v74_v20  ;;  %v287_v26 = vadd.f32 %v281_v23, %v165_v22 }
  0xea   :  { %v168_v28 = vpop.f32.mrf.mxu0  ;;  %v284_v30 = vpop.f32.mrf.mxu1 }
  0xeb   :  { %2086 = vtanh.f32 %v287_v26  ;;  %v2403_v29 = vadd.f32 %v168_v28, %v70_v19  ;;  %v1802_v2 = vmul.f32 -1.442695, %v287_v26 }
  0xec   :  { %v170_v31 = vpop.f32.mrf.mxu0  ;;  %v1912_v33 = vpop.f32.mrf.mxu1 }
  0xed   :  { %v2405_v32 = vadd.f32 %v170_v31, %v74_v20 }
  0xee   :  { %v174_v34 = vpop.f32.mrf.mxu0 }
  0xef   :  { %v2407_v35 = vadd.f32 %v174_v34, %v70_v19  ;;  %v338_v36 = vpop.f32.mrf.mxu1 }
  0xf0   :  { %v176_v37 = vpop.f32.mrf.mxu0 }
  0xf1   :  { %v2409_v38 = vadd.f32 %v176_v37, %v74_v20  ;;  %v1919_v39 = vpop.f32.mrf.mxu1 }
  0xf2   :  { %v178_v40 = vpop.f32.mrf.mxu0 }
  0xf3   :  { %v2411_v41 = vadd.f32 %v178_v40, %v70_v19  ;;  %v341_v42 = vpop.f32.mrf.mxu1 }
  0xf4   :  { %v180_v43 = vpop.f32.mrf.mxu0 }
  0xf5   :  { %v2413_v44 = vadd.f32 %v180_v43, %v74_v20  ;;  %v1920_v45 = vpop.f32.mrf.mxu1 }
  0xf6   :  { %v184_v46 = vpop.f32.mrf.mxu0 }
  0xf7   :  { %v2415_v47 = vadd.f32 %v184_v46, %v70_v19 }
  0xf8   :  { %v2087_v48 = vpop.eup %2086  ;;  %v186_v49 = vpop.f32.mrf.mxu0 }
  0xf9   :  { %v2417_v50 = vadd.f32 %v186_v49, %v74_v20  ;;  %354 = vrot.lane.b32.xlu0 %v2087_v48, %s2281_s24 }
  0xfa   :  { %v188_v51 = vpop.f32.mrf.mxu0 }
  0xfb   :  { %v2420_v52 = vadd.f32 %v188_v51, %v70_v19 }
  0xfc   :  { %v190_v53 = vpop.f32.mrf.mxu0 }
  0xfd   :  { %v2422_v54 = vadd.f32 %v190_v53, %v74_v20 }
  0xfe   :  { %v194_v55 = vpop.f32.mrf.mxu0 }
  0xff   :  { %v2424_v56 = vadd.f32 %v194_v55, %v70_v19 }
 0x100   :  { %v196_v57 = vpop.f32.mrf.mxu0 }
 0x101   :  { %v2426_v58 = vadd.f32 %v196_v57, %v74_v20 }
 0x102   :  { %v198_v59 = vpop.f32.mrf.mxu0 }
 0x103   :  { %v2428_v60 = vadd.f32 %v198_v59, %v70_v19 }
 0x104   :  { %v200_v61 = vpop.f32.mrf.mxu0 }
 0x105   :  { %v201_v62 = vadd.f32 %v200_v61, %v74_v20 }
 0x107   :  { %v344_v63 = vadd.f32 %v338_v36, %v201_v62 }
 0x109   :  { %2088 = vtanh.f32 %v344_v63  ;;  %v1803_v6 = vmul.f32 -1.442695, %v344_v63 }
 0x10a   :  { %2090 = vpow2.f32 %v1802_v2 }
 0x116   :  { %v2089_v1 = vpop.eup %2088 }
 0x117   :  { %378 = vrot.lane.b32.xlu0 %v2089_v1, %s2281_s24  ;;  %v2091_v3 = vpop.eup %2090 }
 0x118   :  { %v348_v5 = vadd.f32 1.0, %v2091_v3 }
 0x11a   :  { %2092 = vrcp.f32 %v348_v5 }
 0x11b   :  { %2094 = vpow2.f32 %v1803_v6 }
 0x127   :  { %v2093_v8 = vpop.eup %2092 }
 0x128   :  { %v2095_v13 = vpop.eup %2094  ;;  %v352_v18 = vmul.f32 0.0, %v2093_v8 }
 0x129   :  { %v372_v14 = vadd.f32 1.0, %v2095_v13 }
 0x12b   :  { %2096 = vrcp.f32 %v372_v14 }
 0x138   :  { %v2097_v15 = vpop.eup %2096 }
 0x139   :  { %v376_v22 = vmul.f32 0.0, %v2097_v15 }
 0x16b   :  { %v355_v11 = vpop.permute.xlu0 %354 }
 0x16c   :  { %v357_v12 = vmul.f32 %v2093_v8, %v355_v11 }
 0x16e   :  { %359 = vrot.lane.b32.xlu1 %v357_v12, %s2287_s0 }
 0x189   :  { %v379_v16 = vpop.permute.xlu0 %378 }
 0x18a   :  { %v381_v17 = vmul.f32 %v2097_v15, %v379_v16 }
 0x18c   :  { %383 = vrot.lane.b32.xlu1 %v381_v17, %s2287_s0 }
 0x1e0   :  { %v360_v19 = vpop.permute.xlu1 %359 }
 0x1e1   :  { %v2433_v20 = vadd.f32 %v360_v19, %v352_v18 }
 0x1e3   :  { %2098 = vtanh.f32 %v2433_v20 }
 0x1f0   :  { %v2099_v21 = vpop.eup %2098 }
 0x1f1   :  { %365 = vrot.lane.b32.xlu0 %v2099_v21, %s2281_s24 }
 0x1fe   :  { %v384_v23 = vpop.permute.xlu1 %383 }
 0x1ff   :  { %v2437_v24 = vadd.f32 %v384_v23, %v376_v22 }
 0x201   :  { %2100 = vtanh.f32 %v2437_v24 }
 0x20e   :  { %v2101_v26 = vpop.eup %2100 }
 0x20f   :  { %389 = vrot.lane.b32.xlu1 %v2101_v26, %s2281_s24 }
 0x263   :  { %v366_v27 = vpop.permute.xlu0 %365 }
 0x264   :  { %v2441_v28 = vmul.f32 %v2093_v8, %v366_v27 }
 0x266   :  { %v408_v30 = vpack.c.bf16 %v2441_v28, %v2441_v28 }
 0x268   :  { %410 = vrot.lane.b32.xlu0 %v408_v30, %s2287_s0 }
 0x281   :  { %v390_v31 = vpop.permute.xlu1 %389 }
 0x282   :  { %v2446_v33 = vmul.f32 %v2097_v15, %v390_v31 }
 0x284   :  { %v460_v34 = vpack.c.bf16 %v2446_v33, %v2446_v33 }
 0x286   :  { %462 = vrot.lane.b32.xlu1 %v460_v34, %s2287_s0 }
 0x2da   :  { %v411_v36 = vpop.permute.xlu0 %410 }
 0x2db   :  { %1926 = vmatmul.mubr.msk.bf16.vlgmr.msra.gmra.mxu1 %vm117_vm1, %v411_v36 }
 0x2dc   :  { %1930 = vmatpush3.bf16.msra.mxu1 %v2361_v9  ;;  %1933 = vmatprep.mubr.msk.bf16.mxu1 %vm2286_vm0, %v2284_v0 }
 0x2dd   :  { %1931 = vmatprep.subr.bf16.mxu1 %v2284_v0 }
 0x2e0   :  { %1932 = vmatpush3.bf16.msra.mxu1 %v2366_v10 }
 0x2e1   :  { %1945 = vmatprep.subr.bf16.mxu1 %v2284_v0 }
 0x2f8   :  { %v463_v37 = vpop.permute.xlu1 %462 }
 0x2f9   :  { %1934 = vmatmul.mubr.msk.bf16.vlgmr.msra.gmra.mxu1 %vm117_vm1, %v463_v37 }
 0x2fa   :  { %1946 = vmatpush3.bf16.msra.mxu1 %v2361_v9  ;;  %1949 = vmatprep.mubr.msk.bf16.mxu1 %vm2286_vm0, %v2284_v0 }
 0x2fb   :  { %1947 = vmatprep.subr.bf16.mxu1 %v2284_v0 }
 0x2fe   :  { %1948 = vmatpush3.bf16.msra.mxu1 %v2366_v10 }
 0x2ff   :  { %1961 = vmatprep.subr.bf16.mxu1 %v2284_v0 }
 0x39b   :  { %v449_v39 = vpop.f32.mrf.mxu1 }
 0x39c   :  { %v455_v40 = vadd.f32 %v449_v39, %v2403_v29 }
 0x39d   :  { %v1927_v42 = vpop.f32.mrf.mxu1 }
 0x39e   :  { %2102 = vtanh.f32 %v455_v40  ;;  %v1806_v59 = vmul.f32 -1.442695, %v455_v40 }
 0x39f   :  { %v452_v43 = vpop.f32.mrf.mxu1 }
 0x3a1   :  { %v1928_v45 = vpop.f32.mrf.mxu1 }
 0x3ab   :  { %v2103_v46 = vpop.eup %2102 }
 0x3ac   :  { %517 = vrot.lane.b32.xlu1 %v2103_v46, %s2281_s24 }
 0x3b9   :  { %v501_v48 = vpop.f32.mrf.mxu1 }
 0x3ba   :  { %v507_v49 = vadd.f32 %v501_v48, %v2426_v58 }
 0x3bb   :  { %v1935_v51 = vpop.f32.mrf.mxu1 }
 0x3bc   :  { %2104 = vtanh.f32 %v507_v49  ;;  %v1807_v62 = vmul.f32 -1.442695, %v507_v49 }
 0x3bd   :  { %v504_v53 = vpop.f32.mrf.mxu1  ;;  %2106 = vpow2.f32 %v1806_v59 }
 0x3bf   :  { %v1936_v55 = vpop.f32.mrf.mxu1 }
 0x3c9   :  { %v2105_v57 = vpop.eup %2104 }
 0x3ca   :  { %541 = vrot.lane.b32.xlu0 %v2105_v57, %s2281_s24  ;;  %v2107_v29 = vpop.eup %2106 }
 0x3cb   :  { %v511_v61 = vadd.f32 1.0, %v2107_v29 }
 0x3cd   :  { %2108 = vrcp.f32 %v511_v61 }
 0x3ce   :  { %2110 = vpow2.f32 %v1807_v62 }
 0x3da   :  { %v2109_v63 = vpop.eup %2108 }
 0x3db   :  { %v2111_v58 = vpop.eup %2110  ;;  %v515_v11 = vmul.f32 %v2109_v63, %v2433_v20 }
 0x3dc   :  { %v535_v3 = vadd.f32 1.0, %v2111_v58 }
 0x3de   :  { %2112 = vrcp.f32 %v535_v3 }
 0x3eb   :  { %v2113_v5 = vpop.eup %2112 }
 0x3ec   :  { %v539_v15 = vmul.f32 %v2113_v5, %v2437_v24 }
 0x41e   :  { %v518_v1 = vpop.permute.xlu1 %517 }
 0x41f   :  { %v520_v2 = vmul.f32 %v2109_v63, %v518_v1 }
 0x421   :  { %522 = vrot.lane.b32.xlu1 %v520_v2, %s2287_s0 }
 0x43c   :  { %v542_v6 = vpop.permute.xlu0 %541 }
 0x43d   :  { %v544_v8 = vmul.f32 %v2113_v5, %v542_v6 }
 0x43f   :  { %546 = vrot.lane.b32.xlu0 %v544_v8, %s2287_s0 }
 0x493   :  { %v523_v12 = vpop.permute.xlu1 %522 }
 0x494   :  { %v2472_v13 = vadd.f32 %v523_v12, %v515_v11 }
 0x496   :  { %2114 = vtanh.f32 %v2472_v13 }
 0x4a3   :  { %v2115_v14 = vpop.eup %2114 }
 0x4a4   :  { %528 = vrot.lane.b32.xlu1 %v2115_v14, %s2281_s24 }
 0x4b1   :  { %v547_v16 = vpop.permute.xlu0 %546 }
 0x4b2   :  { %v2477_v17 = vadd.f32 %v547_v16, %v539_v15 }
 0x4b4   :  { %2116 = vtanh.f32 %v2477_v17 }
 0x4c1   :  { %v2117_v18 = vpop.eup %2116 }
 0x4c2   :  { %552 = vrot.lane.b32.xlu0 %v2117_v18, %s2281_s24 }
 0x516   :  { %v529_v19 = vpop.permute.xlu1 %528 }
 0x517   :  { %v2481_v20 = vmul.f32 %v2109_v63, %v529_v19 }
 0x519   :  { %v572_v21 = vpack.c.bf16 %v2481_v20, %v2481_v20 }
 0x51b   :  { %574 = vrot.lane.b32.xlu1 %v572_v21, %s2287_s0 }
 0x534   :  { %v553_v22 = vpop.permute.xlu0 %552 }
 0x535   :  { %v2486_v23 = vmul.f32 %v2113_v5, %v553_v22 }
 0x537   :  { %v624_v24 = vpack.c.bf16 %v2486_v23, %v2486_v23 }
 0x539   :  { %626 = vrot.lane.b32.xlu0 %v624_v24, %s2287_s0 }
 0x58d   :  { %v575_v26 = vpop.permute.xlu1 %574 }
 0x58e   :  { %1942 = vmatmul.mubr.msk.bf16.vlgmr.msra.gmra.mxu0 %vm117_vm1, %v575_v26 }
 0x58f   :  { %1954 = vmatpush3.bf16.msra.mxu0 %v2345_v4  ;;  %1957 = vmatprep.mubr.msk.bf16.mxu0 %vm2286_vm0, %v2284_v0 }
 0x590   :  { %1955 = vmatprep.subr.bf16.mxu0 %v2284_v0 }
 0x593   :  { %1956 = vmatpush3.bf16.msra.mxu0 %v2354_v7 }
 0x594   :  { %1969 = vmatprep.subr.bf16.mxu0 %v2284_v0 }
 0x5ab   :  { %v627_v27 = vpop.permute.xlu0 %626 }
 0x5ac   :  { %1950 = vmatmul.mubr.msk.bf16.vlgmr.msra.gmra.mxu1 %vm117_vm1, %v627_v27 }
 0x5ad   :  { %1962 = vmatpush3.bf16.msra.mxu1 %v2361_v9  ;;  %1965 = vmatprep.mubr.msk.bf16.mxu1 %vm2286_vm0, %v2284_v0 }
 0x5ae   :  { %1963 = vmatprep.subr.bf16.mxu1 %v2284_v0 }
 0x5b1   :  { %1964 = vmatpush3.bf16.msra.mxu1 %v2366_v10 }
 0x5b2   :  { %1977 = vmatprep.subr.bf16.mxu1 %v2284_v0 }
 0x64e   :  { %v613_v30 = vpop.f32.mrf.mxu0 }
 0x64f   :  { %v619_v31 = vadd.f32 %v613_v30, %v2407_v35 }
 0x650   :  { %v1943_v34 = vpop.f32.mrf.mxu0 }
 0x651   :  { %2118 = vtanh.f32 %v619_v31  ;;  %v1810_v49 = vmul.f32 -1.442695, %v619_v31 }
 0x652   :  { %v616_v36 = vpop.f32.mrf.mxu0 }
 0x654   :  { %v1944_v37 = vpop.f32.mrf.mxu0 }
 0x65e   :  { %v2119_v39 = vpop.eup %2118 }
 0x65f   :  { %681 = vrot.lane.b32.xlu1 %v2119_v39, %s2281_s24 }
 0x66c   :  { %v665_v40 = vpop.f32.mrf.mxu1 }
 0x66d   :  { %v671_v42 = vadd.f32 %v665_v40, %v2422_v54 }
 0x66e   :  { %v1951_v43 = vpop.f32.mrf.mxu1 }
 0x66f   :  { %2120 = vtanh.f32 %v671_v42  ;;  %v1811_v53 = vmul.f32 -1.442695, %v671_v42 }
 0x670   :  { %v668_v45 = vpop.f32.mrf.mxu1  ;;  %2122 = vpow2.f32 %v1810_v49 }
 0x672   :  { %v1952_v46 = vpop.f32.mrf.mxu1 }
 0x67c   :  { %v2121_v48 = vpop.eup %2120 }
 0x67d   :  { %705 = vrot.lane.b32.xlu0 %v2121_v48, %s2281_s24  ;;  %v2123_v35 = vpop.eup %2122 }
 0x67e   :  { %v675_v51 = vadd.f32 1.0, %v2123_v35 }
 0x680   :  { %2124 = vrcp.f32 %v675_v51 }
 0x681   :  { %2126 = vpow2.f32 %v1811_v53 }
 0x68d   :  { %v2125_v55 = vpop.eup %2124 }
 0x68e   :  { %v2127_v54 = vpop.eup %2126  ;;  %v679_v1 = vmul.f32 %v2125_v55, %v2472_v13 }
 0x68f   :  { %v699_v29 = vadd.f32 1.0, %v2127_v54 }
 0x691   :  { %2128 = vrcp.f32 %v699_v29 }
 0x69e   :  { %v2129_v61 = vpop.eup %2128 }
 0x69f   :  { %v703_v5 = vmul.f32 %v2129_v61, %v2477_v17 }
 0x6d1   :  { %v682_v57 = vpop.permute.xlu1 %681 }
 0x6d2   :  { %v684_v59 = vmul.f32 %v2125_v55, %v682_v57 }
 0x6d4   :  { %686 = vrot.lane.b32.xlu1 %v684_v59, %s2287_s0 }
 0x6ef   :  { %v706_v62 = vpop.permute.xlu0 %705 }
 0x6f0   :  { %v708_v63 = vmul.f32 %v2129_v61, %v706_v62 }
 0x6f2   :  { %710 = vrot.lane.b32.xlu0 %v708_v63, %s2287_s0 }
 0x746   :  { %v687_v2 = vpop.permute.xlu1 %686 }
 0x747   :  { %v2512_v58 = vadd.f32 %v687_v2, %v679_v1 }
 0x749   :  { %2130 = vtanh.f32 %v2512_v58 }
 0x756   :  { %v2131_v3 = vpop.eup %2130 }
 0x757   :  { %692 = vrot.lane.b32.xlu1 %v2131_v3, %s2281_s24 }
 0x764   :  { %v711_v6 = vpop.permute.xlu0 %710 }
 0x765   :  { %v2517_v8 = vadd.f32 %v711_v6, %v703_v5 }
 0x767   :  { %2132 = vtanh.f32 %v2517_v8 }
 0x774   :  { %v2133_v11 = vpop.eup %2132 }
 0x775   :  { %716 = vrot.lane.b32.xlu0 %v2133_v11, %s2281_s24 }
 0x7c9   :  { %v693_v12 = vpop.permute.xlu1 %692 }
 0x7ca   :  { %v2521_v13 = vmul.f32 %v2125_v55, %v693_v12 }
 0x7cc   :  { %v736_v14 = vpack.c.bf16 %v2521_v13, %v2521_v13 }
 0x7ce   :  { %738 = vrot.lane.b32.xlu1 %v736_v14, %s2287_s0 }
 0x7e7   :  { %v717_v15 = vpop.permute.xlu0 %716 }
 0x7e8   :  { %v2526_v16 = vmul.f32 %v2129_v61, %v717_v15 }
 0x7ea   :  { %v788_v17 = vpack.c.bf16 %v2526_v16, %v2526_v16 }
 0x7ec   :  { %790 = vrot.lane.b32.xlu0 %v788_v17, %s2287_s0 }
 0x840   :  { %v739_v18 = vpop.permute.xlu1 %738 }
 0x841   :  { %1958 = vmatmul.mubr.msk.bf16.vlgmr.msra.gmra.mxu0 %vm117_vm1, %v739_v18 }
 0x842   :  { %1970 = vmatpush3.bf16.msra.mxu0 %v2345_v4  ;;  %1973 = vmatprep.mubr.msk.bf16.mxu0 %vm2286_vm0, %v2284_v0 }
 0x843   :  { %1971 = vmatprep.subr.bf16.mxu0 %v2284_v0 }
 0x846   :  { %1972 = vmatpush3.bf16.msra.mxu0 %v2354_v7 }
 0x847   :  { %1985 = vmatprep.subr.bf16.mxu0 %v2284_v0 }
 0x85e   :  { %v791_v19 = vpop.permute.xlu0 %790 }
 0x85f   :  { %1966 = vmatmul.mubr.msk.bf16.vlgmr.msra.gmra.mxu1 %vm117_vm1, %v791_v19 }
 0x860   :  { %1978 = vmatpush3.bf16.msra.mxu1 %v2361_v9  ;;  %1981 = vmatprep.mubr.msk.bf16.mxu1 %vm2286_vm0, %v2284_v0 }
 0x861   :  { %1979 = vmatprep.subr.bf16.mxu1 %v2284_v0 }
 0x864   :  { %1980 = vmatpush3.bf16.msra.mxu1 %v2366_v10 }
 0x865   :  { %1993 = vmatprep.subr.bf16.mxu1 %v2284_v0 }
 0x901   :  { %v777_v21 = vpop.f32.mrf.mxu0 }
 0x902   :  { %v783_v22 = vadd.f32 %v777_v21, %v2411_v41 }
 0x903   :  { %v1959_v24 = vpop.f32.mrf.mxu0 }
 0x904   :  { %2134 = vtanh.f32 %v783_v22  ;;  %v1814_v42 = vmul.f32 -1.442695, %v783_v22 }
 0x905   :  { %v780_v26 = vpop.f32.mrf.mxu0 }
 0x907   :  { %v1960_v27 = vpop.f32.mrf.mxu0 }
 0x911   :  { %v2135_v30 = vpop.eup %2134 }
 0x912   :  { %845 = vrot.lane.b32.xlu1 %v2135_v30, %s2281_s24 }
 0x91f   :  { %v829_v31 = vpop.f32.mrf.mxu1 }
 0x920   :  { %v835_v34 = vadd.f32 %v829_v31, %v2417_v50 }
 0x921   :  { %v1967_v36 = vpop.f32.mrf.mxu1 }
 0x922   :  { %2136 = vtanh.f32 %v835_v34  ;;  %v1815_v45 = vmul.f32 -1.442695, %v835_v34 }
 0x923   :  { %v832_v37 = vpop.f32.mrf.mxu1  ;;  %2138 = vpow2.f32 %v1814_v42 }
 0x925   :  { %v1968_v39 = vpop.f32.mrf.mxu1 }
 0x92f   :  { %v2137_v40 = vpop.eup %2136 }
 0x930   :  { %869 = vrot.lane.b32.xlu0 %v2137_v40, %s2281_s24  ;;  %v2139_v41 = vpop.eup %2138 }
 0x931   :  { %v839_v43 = vadd.f32 1.0, %v2139_v41 }
 0x933   :  { %2140 = vrcp.f32 %v839_v43 }
 0x934   :  { %2142 = vpow2.f32 %v1815_v45 }
 0x940   :  { %v2141_v46 = vpop.eup %2140 }
 0x941   :  { %v2143_v50 = vpop.eup %2142  ;;  %v843_v57 = vmul.f32 %v2141_v46, %v2512_v58 }
 0x942   :  { %v863_v35 = vadd.f32 1.0, %v2143_v50 }
 0x944   :  { %2144 = vrcp.f32 %v863_v35 }
 0x951   :  { %v2145_v51 = vpop.eup %2144 }
 0x952   :  { %v867_v61 = vmul.f32 %v2145_v51, %v2517_v8 }
 0x984   :  { %v846_v48 = vpop.permute.xlu1 %845 }
 0x985   :  { %v848_v49 = vmul.f32 %v2141_v46, %v846_v48 }
 0x987   :  { %850 = vrot.lane.b32.xlu1 %v848_v49, %s2287_s0 }
 0x9a2   :  { %v870_v53 = vpop.permute.xlu0 %869 }
 0x9a3   :  { %v872_v55 = vmul.f32 %v2145_v51, %v870_v53 }
 0x9a5   :  { %874 = vrot.lane.b32.xlu0 %v872_v55, %s2287_s0 }
 0x9f9   :  { %v851_v59 = vpop.permute.xlu1 %850 }
 0x9fa   :  { %v2552_v54 = vadd.f32 %v851_v59, %v843_v57 }
 0x9fc   :  { %2146 = vtanh.f32 %v2552_v54 }
 0xa09   :  { %v2147_v29 = vpop.eup %2146 }
 0xa0a   :  { %856 = vrot.lane.b32.xlu1 %v2147_v29, %s2281_s24 }
 0xa17   :  { %v875_v62 = vpop.permute.xlu0 %874 }
 0xa18   :  { %v2557_v63 = vadd.f32 %v875_v62, %v867_v61 }
 0xa1a   :  { %2148 = vtanh.f32 %v2557_v63 }
 0xa27   :  { %v2149_v1 = vpop.eup %2148 }
 0xa28   :  { %880 = vrot.lane.b32.xlu0 %v2149_v1, %s2281_s24 }
 0xa7c   :  { %v857_v2 = vpop.permute.xlu1 %856 }
 0xa7d   :  { %v2561_v58 = vmul.f32 %v2141_v46, %v857_v2 }
 0xa7f   :  { %v897_v3 = vpack.c.bf16 %v2561_v58, %v2561_v58 }
 0xa81   :  { %899 = vrot.lane.b32.xlu1 %v897_v3, %s2287_s0 }
 0xa9a   :  { %v881_v5 = vpop.permute.xlu0 %880 }
 0xa9b   :  { %v2566_v6 = vmul.f32 %v2145_v51, %v881_v5 }
 0xa9d   :  { %v946_v8 = vpack.c.bf16 %v2566_v6, %v2566_v6 }
 0xa9f   :  { %948 = vrot.lane.b32.xlu0 %v946_v8, %s2287_s0 }
 0xaf3   :  { %v900_v11 = vpop.permute.xlu1 %899 }
 0xaf4   :  { %1974 = vmatmul.mubr.msk.bf16.vlgmr.msra.gmra.mxu0 %vm117_vm1, %v900_v11 }
 0xaf5   :  { %1986 = vmatpush3.bf16.msra.mxu0 %v2345_v4  ;;  %1989 = vmatprep.mubr.msk.bf16.mxu0 %vm2286_vm0, %v2284_v0 }
 0xaf6   :  { %1987 = vmatprep.subr.bf16.mxu0 %v2284_v0 }
 0xaf9   :  { %1988 = vmatpush3.bf16.msra.mxu0 %v2354_v7 }
 0xafa   :  { %2001 = vmatprep.subr.bf16.mxu0 %v2284_v0 }
 0xb11   :  { %v949_v12 = vpop.permute.xlu0 %948 }
 0xb12   :  { %1982 = vmatmul.mubr.msk.bf16.vlgmr.msra.gmra.mxu1 %vm117_vm1, %v949_v12 }
 0xb13   :  { %1994 = vmatpush3.bf16.msra.mxu1 %v2361_v9  ;;  %1997 = vmatprep.mubr.msk.bf16.mxu1 %vm2286_vm0, %v2284_v0 }
 0xb14   :  { %1995 = vmatprep.subr.bf16.mxu1 %v2284_v0 }
 0xb17   :  { %1996 = vmatpush3.bf16.msra.mxu1 %v2366_v10 }
 0xb18   :  { %2009 = vmatprep.subr.bf16.mxu1 %v2284_v0 }
 0xbb4   :  { %v938_v14 = vpop.f32.mrf.mxu0 }
 0xbb5   :  { %v944_v15 = vadd.f32 %v938_v14, %v2415_v47 }
 0xbb6   :  { %v1975_v17 = vpop.f32.mrf.mxu0 }
 0xbb7   :  { %2150 = vtanh.f32 %v944_v15  ;;  %v1818_v34 = vmul.f32 -1.442695, %v944_v15 }
 0xbb8   :  { %v941_v18 = vpop.f32.mrf.mxu0 }
 0xbba   :  { %v1976_v19 = vpop.f32.mrf.mxu0 }
 0xbc4   :  { %v2151_v21 = vpop.eup %2150 }
 0xbc5   :  { %1003 = vrot.lane.b32.xlu1 %v2151_v21, %s2281_s24 }
 0xbd2   :  { %v987_v22 = vpop.f32.mrf.mxu1 }
 0xbd3   :  { %v993_v24 = vadd.f32 %v987_v22, %v2413_v44 }
 0xbd4   :  { %v1983_v26 = vpop.f32.mrf.mxu1 }
 0xbd5   :  { %2152 = vtanh.f32 %v993_v24  ;;  %v1819_v37 = vmul.f32 -1.442695, %v993_v24 }
 0xbd6   :  { %v990_v27 = vpop.f32.mrf.mxu1  ;;  %2154 = vpow2.f32 %v1818_v34 }
 0xbd8   :  { %v1984_v30 = vpop.f32.mrf.mxu1 }
 0xbe2   :  { %v2153_v31 = vpop.eup %2152 }
 0xbe3   :  { %1027 = vrot.lane.b32.xlu0 %v2153_v31, %s2281_s24  ;;  %v2155_v47 = vpop.eup %2154 }
 0xbe4   :  { %v997_v36 = vadd.f32 1.0, %v2155_v47 }
 0xbe6   :  { %2156 = vrcp.f32 %v997_v36 }
 0xbe7   :  { %2158 = vpow2.f32 %v1819_v37 }
 0xbf3   :  { %v2157_v39 = vpop.eup %2156 }
 0xbf4   :  { %v2159_v44 = vpop.eup %2158  ;;  %v1001_v48 = vmul.f32 %v2157_v39, %v2552_v54 }
 0xbf5   :  { %v1021_v41 = vadd.f32 1.0, %v2159_v44 }
 0xbf7   :  { %2160 = vrcp.f32 %v1021_v41 }
 0xc04   :  { %v2161_v43 = vpop.eup %2160 }
 0xc05   :  { %v1025_v51 = vmul.f32 %v2161_v43, %v2557_v63 }
 0xc37   :  { %v1004_v40 = vpop.permute.xlu1 %1003 }
 0xc38   :  { %v1006_v42 = vmul.f32 %v2157_v39, %v1004_v40 }
 0xc3a   :  { %1008 = vrot.lane.b32.xlu1 %v1006_v42, %s2287_s0 }
 0xc55   :  { %v1028_v45 = vpop.permute.xlu0 %1027 }
 0xc56   :  { %v1030_v46 = vmul.f32 %v2161_v43, %v1028_v45 }
 0xc58   :  { %1032 = vrot.lane.b32.xlu0 %v1030_v46, %s2287_s0 }
 0xcac   :  { %v1009_v49 = vpop.permute.xlu1 %1008 }
 0xcad   :  { %v2592_v50 = vadd.f32 %v1009_v49, %v1001_v48 }
 0xcaf   :  { %2162 = vtanh.f32 %v2592_v50 }
 0xcbc   :  { %v2163_v35 = vpop.eup %2162 }
 0xcbd   :  { %1014 = vrot.lane.b32.xlu1 %v2163_v35, %s2281_s24 }
 0xcca   :  { %v1033_v53 = vpop.permute.xlu0 %1032 }
 0xccb   :  { %v2597_v55 = vadd.f32 %v1033_v53, %v1025_v51 }
 0xccd   :  { %2164 = vtanh.f32 %v2597_v55 }
 0xcda   :  { %v2165_v57 = vpop.eup %2164 }
 0xcdb   :  { %1038 = vrot.lane.b32.xlu0 %v2165_v57, %s2281_s24 }
 0xd2f   :  { %v1015_v59 = vpop.permute.xlu1 %1014 }
 0xd30   :  { %v2601_v54 = vmul.f32 %v2157_v39, %v1015_v59 }
 0xd32   :  { %v1055_v29 = vpack.c.bf16 %v2601_v54, %v2601_v54 }
 0xd34   :  { %1057 = vrot.lane.b32.xlu1 %v1055_v29, %s2287_s0 }
 0xd4d   :  { %v1039_v61 = vpop.permute.xlu0 %1038 }
 0xd4e   :  { %v2606_v62 = vmul.f32 %v2161_v43, %v1039_v61 }
 0xd50   :  { %v1104_v63 = vpack.c.bf16 %v2606_v62, %v2606_v62 }
 0xd52   :  { %1106 = vrot.lane.b32.xlu0 %v1104_v63, %s2287_s0 }
 0xda6   :  { %v1058_v1 = vpop.permute.xlu1 %1057 }
 0xda7   :  { %1990 = vmatmul.mubr.msk.bf16.vlgmr.msra.gmra.mxu0 %vm117_vm1, %v1058_v1 }
 0xda8   :  { %2002 = vmatpush3.bf16.msra.mxu0 %v2345_v4  ;;  %2005 = vmatprep.mubr.msk.bf16.mxu0 %vm2286_vm0, %v2284_v0 }
 0xda9   :  { %2003 = vmatprep.subr.bf16.mxu0 %v2284_v0 }
 0xdac   :  { %2004 = vmatpush3.bf16.msra.mxu0 %v2354_v7 }
 0xdad   :  { %2017 = vmatprep.subr.bf16.mxu0 %v2284_v0 }
 0xdc4   :  { %v1107_v2 = vpop.permute.xlu0 %1106 }
 0xdc5   :  { %1998 = vmatmul.mubr.msk.bf16.vlgmr.msra.gmra.mxu1 %vm117_vm1, %v1107_v2 }
 0xdc6   :  { %2010 = vmatpush3.bf16.msra.mxu1 %v2361_v9  ;;  %2013 = vmatprep.mubr.msk.bf16.mxu1 %vm2286_vm0, %v2284_v0 }
 0xdc7   :  { %2011 = vmatprep.subr.bf16.mxu1 %v2284_v0 }
 0xdca   :  { %2012 = vmatpush3.bf16.msra.mxu1 %v2366_v10 }
 0xdcb   :  { %2025 = vmatprep.subr.bf16.mxu1 %v2284_v0 }
 0xe67   :  { %v1096_v3 = vpop.f32.mrf.mxu0 }
 0xe68   :  { %v1102_v5 = vadd.f32 %v1096_v3, %v2420_v52 }
 0xe69   :  { %v1991_v8 = vpop.f32.mrf.mxu0 }
 0xe6a   :  { %2166 = vtanh.f32 %v1102_v5  ;;  %v1822_v24 = vmul.f32 -1.442695, %v1102_v5 }
 0xe6b   :  { %v1099_v11 = vpop.f32.mrf.mxu0 }
 0xe6d   :  { %v1992_v12 = vpop.f32.mrf.mxu0 }
 0xe77   :  { %v2167_v14 = vpop.eup %2166 }
 0xe78   :  { %1161 = vrot.lane.b32.xlu1 %v2167_v14, %s2281_s24 }
 0xe85   :  { %v1145_v15 = vpop.f32.mrf.mxu1 }
 0xe86   :  { %v1151_v17 = vadd.f32 %v1145_v15, %v2409_v38 }
 0xe87   :  { %v1999_v18 = vpop.f32.mrf.mxu1 }
 0xe88   :  { %2168 = vtanh.f32 %v1151_v17  ;;  %v1823_v27 = vmul.f32 -1.442695, %v1151_v17 }
 0xe89   :  { %v1148_v19 = vpop.f32.mrf.mxu1  ;;  %2170 = vpow2.f32 %v1822_v24 }
 0xe8b   :  { %v2000_v21 = vpop.f32.mrf.mxu1 }
 0xe95   :  { %v2169_v22 = vpop.eup %2168 }
 0xe96   :  { %1185 = vrot.lane.b32.xlu0 %v2169_v22, %s2281_s24  ;;  %v2171_v52 = vpop.eup %2170 }
 0xe97   :  { %v1155_v26 = vadd.f32 1.0, %v2171_v52 }
 0xe99   :  { %2172 = vrcp.f32 %v1155_v26 }
 0xe9a   :  { %2174 = vpow2.f32 %v1823_v27 }
 0xea6   :  { %v2173_v30 = vpop.eup %2172 }
 0xea7   :  { %v2175_v38 = vpop.eup %2174  ;;  %v1159_v40 = vmul.f32 %v2173_v30, %v2592_v50 }
 0xea8   :  { %v1179_v47 = vadd.f32 1.0, %v2175_v38 }
 0xeaa   :  { %2176 = vrcp.f32 %v1179_v47 }
 0xeb7   :  { %v2177_v36 = vpop.eup %2176 }
 0xeb8   :  { %v1183_v43 = vmul.f32 %v2177_v36, %v2597_v55 }
 0xeea   :  { %v1162_v31 = vpop.permute.xlu1 %1161 }
 0xeeb   :  { %v1164_v34 = vmul.f32 %v2173_v30, %v1162_v31 }
 0xeed   :  { %1166 = vrot.lane.b32.xlu1 %v1164_v34, %s2287_s0 }
 0xf08   :  { %v1186_v37 = vpop.permute.xlu0 %1185 }
 0xf09   :  { %v1188_v39 = vmul.f32 %v2177_v36, %v1186_v37 }
 0xf0b   :  { %1190 = vrot.lane.b32.xlu0 %v1188_v39, %s2287_s0 }
 0xf5f   :  { %v1167_v42 = vpop.permute.xlu1 %1166 }
 0xf60   :  { %v2632_v44 = vadd.f32 %v1167_v42, %v1159_v40 }
 0xf62   :  { %2178 = vtanh.f32 %v2632_v44 }
 0xf6f   :  { %v2179_v41 = vpop.eup %2178 }
 0xf70   :  { %1172 = vrot.lane.b32.xlu1 %v2179_v41, %s2281_s24 }
 0xf7d   :  { %v1191_v45 = vpop.permute.xlu0 %1190 }
 0xf7e   :  { %v2637_v46 = vadd.f32 %v1191_v45, %v1183_v43 }
 0xf80   :  { %2180 = vtanh.f32 %v2637_v46 }
 0xf8d   :  { %v2181_v48 = vpop.eup %2180 }
 0xf8e   :  { %1196 = vrot.lane.b32.xlu0 %v2181_v48, %s2281_s24 }
 0xfe2   :  { %v1173_v49 = vpop.permute.xlu1 %1172 }
 0xfe3   :  { %v2641_v50 = vmul.f32 %v2173_v30, %v1173_v49 }
 0xfe5   :  { %v1213_v35 = vpack.c.bf16 %v2641_v50, %v2641_v50 }
 0xfe7   :  { %1215 = vrot.lane.b32.xlu1 %v1213_v35, %s2287_s0 }
0x1000   :  { %v1197_v51 = vpop.permute.xlu0 %1196 }
0x1001   :  { %v2646_v53 = vmul.f32 %v2177_v36, %v1197_v51 }
0x1003   :  { %v1262_v55 = vpack.c.bf16 %v2646_v53, %v2646_v53 }
0x1005   :  { %1264 = vrot.lane.b32.xlu0 %v1262_v55, %s2287_s0 }
0x1059   :  { %v1216_v57 = vpop.permute.xlu1 %1215 }
0x105a   :  { %2006 = vmatmul.mubr.msk.bf16.vlgmr.msra.gmra.mxu0 %vm117_vm1, %v1216_v57 }
0x105b   :  { %2018 = vmatpush3.bf16.msra.mxu0 %v2345_v4  ;;  %2021 = vmatprep.mubr.msk.bf16.mxu0 %vm2286_vm0, %v2284_v0 }
0x105c   :  { %2019 = vmatprep.subr.bf16.mxu0 %v2284_v0 }
0x105f   :  { %2020 = vmatpush3.bf16.msra.mxu0 %v2354_v7 }
0x1077   :  { %v1265_v59 = vpop.permute.xlu0 %1264 }
0x1078   :  { %2014 = vmatmul.mubr.msk.bf16.vlgmr.msra.gmra.mxu1 %vm117_vm1, %v1265_v59 }
0x1079   :  { %2026 = vmatpush3.bf16.msra.mxu1 %v2361_v9  ;;  %2029 = vmatprep.mubr.msk.bf16.mxu1 %vm2286_vm0, %v2284_v0 }
0x107a   :  { %2027 = vmatprep.subr.bf16.mxu1 %v2284_v0 }
0x107d   :  { %2028 = vmatpush3.bf16.msra.mxu1 %v2366_v10 }
0x111a   :  { %v1254_v4 = vpop.f32.mrf.mxu0 }
0x111b   :  { %v1260_v29 = vadd.f32 %v1254_v4, %v2424_v56 }
0x111c   :  { %v2007_v61 = vpop.f32.mrf.mxu0 }
0x111d   :  { %2182 = vtanh.f32 %v1260_v29  ;;  %v1826_v10 = vmul.f32 -1.442695, %v1260_v29 }
0x111e   :  { %v1257_v63 = vpop.f32.mrf.mxu0 }
0x1120   :  { %v2008_v1 = vpop.f32.mrf.mxu0 }
0x112a   :  { %v2183_v7 = vpop.eup %2182 }
0x112b   :  { %1319 = vrot.lane.b32.xlu1 %v2183_v7, %s2281_s24 }
0x1138   :  { %v1303_v2 = vpop.f32.mrf.mxu1 }
0x1139   :  { %v1309_v9 = vadd.f32 %v1303_v2, %v2405_v32 }
0x113a   :  { %v2015_v3 = vpop.f32.mrf.mxu1 }
0x113b   :  { %2184 = vtanh.f32 %v1309_v9  ;;  %v1827_v12 = vmul.f32 -1.442695, %v1309_v9 }
0x113c   :  { %v1306_v5 = vpop.f32.mrf.mxu1  ;;  %2186 = vpow2.f32 %v1826_v10 }
0x113e   :  { %v2016_v8 = vpop.f32.mrf.mxu1 }
0x1148   :  { %v2185_v0 = vpop.eup %2184 }
0x1149   :  { %1343 = vrot.lane.b32.xlu0 %v2185_v0, %s2281_s24  ;;  %v2187_v56 = vpop.eup %2186 }
0x114a   :  { %v1313_v11 = vadd.f32 1.0, %v2187_v56 }
0x114c   :  { %2188 = vrcp.f32 %v1313_v11 }
0x114d   :  { %2190 = vpow2.f32 %v1827_v12 }
0x1159   :  { %v2189_v14 = vpop.eup %2188 }
0x115a   :  { %v2191_v32 = vpop.eup %2190  ;;  %v1317_v24 = vmul.f32 %v2189_v14, %v2632_v44 }
0x115b   :  { %v1337_v18 = vadd.f32 1.0, %v2191_v32 }
0x115d   :  { %2192 = vrcp.f32 %v1337_v18  ;;  %v2082_v18 = vld [vmem:[#allocation8 + $0x8] sm:$0xff]  }
0x115e   :  { %2045 = vmatprep.subr.bf16.mxu1 %v2082_v18 }
0x116a   :  { %v2193_v19 = vpop.eup %2192 }
0x116b   :  { %v1341_v30 = vmul.f32 %v2193_v19, %v2637_v46 }
0x119d   :  { %v1320_v15 = vpop.permute.xlu1 %1319 }
0x119e   :  { %v1322_v17 = vmul.f32 %v2189_v14, %v1320_v15 }
0x11a0   :  { %1324 = vrot.lane.b32.xlu1 %v1322_v17, %s2287_s0 }
0x11bb   :  { %v1344_v21 = vpop.permute.xlu0 %1343 }
0x11bc   :  { %v1346_v22 = vmul.f32 %v2193_v19, %v1344_v21 }
0x11be   :  { %1348 = vrot.lane.b32.xlu0 %v1346_v22, %s2287_s0 }
0x1212   :  { %v1325_v52 = vpop.permute.xlu1 %1324 }
0x1213   :  { %v1327_v26 = vadd.f32 %v1325_v52, %v1317_v24 }
0x1215   :  { %2194 = vtanh.f32 %v1327_v26 }
0x1222   :  { %v2195_v27 = vpop.eup %2194 }
0x1223   :  { %1330 = vrot.lane.b32.xlu1 %v2195_v27, %s2281_s24 }
0x1230   :  { %v1349_v31 = vpop.permute.xlu0 %1348 }
0x1231   :  { %v1351_v34 = vadd.f32 %v1349_v31, %v1341_v30 }
0x1233   :  { %2196 = vtanh.f32 %v1351_v34 }
0x1240   :  { %v2197_v38 = vpop.eup %2196 }
0x1241   :  { %1354 = vrot.lane.b32.xlu0 %v2197_v38, %s2281_s24 }
0x1295   :  { %v1331_v47 = vpop.permute.xlu1 %1330 }
0x1296   :  { %v2673_v36 = vmul.f32 %v2189_v14, %v1331_v47 }
0x1298   :  { %v1371_v37 = vpack.c.bf16 %v2673_v36, %v2673_v36 }
0x129a   :  { %1373 = vrot.lane.b32.xlu1 %v1371_v37, %s2287_s0 }
0x12b3   :  { %v1355_v39 = vpop.permute.xlu0 %1354 }
0x12b4   :  { %v2678_v40 = vmul.f32 %v2193_v19, %v1355_v39 }
0x12b6   :  { %v1420_v42 = vpack.c.bf16 %v2678_v40, %v2678_v40 }
0x12b8   :  { %1422 = vrot.lane.b32.xlu0 %v1420_v42, %s2287_s0 }
0x130c   :  { %v1374_v44 = vpop.permute.xlu1 %1373 }
0x130d   :  { %2022 = vmatmul.mubr.msk.bf16.vlgmr.msra.gmra.mxu0 %vm117_vm1, %v1374_v44 }
0x132a   :  { %v1423_v41 = vpop.permute.xlu0 %1422 }
0x132b   :  { %2030 = vmatmul.mubr.msk.bf16.vlgmr.msra.gmra.mxu1 %vm117_vm1, %v1423_v41 }
0x132c   :  { %2046 = vmatpush3.bf16.msra.mxu1 %v2082_v18 }
0x13cd   :  { %v1412_v43 = vpop.f32.mrf.mxu0 }
0x13ce   :  { %v1418_v45 = vadd.f32 %v1412_v43, %v2428_v60 }
0x13cf   :  { %v2023_v46 = vpop.f32.mrf.mxu0 }
0x13d0   :  { %2198 = vtanh.f32 %v1418_v45  ;;  %v1830_v61 = vmul.f32 -1.442695, %v1418_v45 }
0x13d1   :  { %v1415_v48 = vpop.f32.mrf.mxu0 }
0x13d3   :  { %v2024_v49 = vpop.f32.mrf.mxu0 }
0x13dd   :  { %v2199_v35 = vpop.eup %2198 }
0x13de   :  { %1477 = vrot.lane.b32.xlu1 %v2199_v35, %s2281_s24 }
0x13eb   :  { %v1461_v51 = vpop.f32.mrf.mxu1 }
0x13ec   :  { %v1467_v55 = vadd.f32 %v1461_v51, %v2401_v25 }
0x13ed   :  { %v2031_v57 = vpop.f32.mrf.mxu1 }
0x13ee   :  { %2200 = vtanh.f32 %v1467_v55  ;;  %v1831_v1 = vmul.f32 -1.442695, %v1467_v55 }
0x13ef   :  { %v1464_v59 = vpop.f32.mrf.mxu1  ;;  %2202 = vpow2.f32 %v1830_v61 }
0x13f1   :  { %v2032_v4 = vpop.f32.mrf.mxu1 }
0x13fb   :  { %v2201_v29 = vpop.eup %2200 }
0x13fc   :  { %1501 = vrot.lane.b32.xlu0 %v2201_v29, %s2281_s24  ;;  %v2203_v60 = vpop.eup %2202 }
0x13fd   :  { %v1471_v63 = vadd.f32 1.0, %v2203_v60 }
0x13ff   :  { %2204 = vrcp.f32 %v1471_v63 }
0x1400   :  { %2206 = vpow2.f32 %v1831_v1 }
0x140c   :  { %v2689_v7 = vpop.eup %2204 }
0x140d   :  { %v2207_v25 = vpop.eup %2206  ;;  %v1475_v10 = vmul.f32 %v2689_v7, %v1327_v26 }
0x140e   :  { %v1495_v3 = vadd.f32 1.0, %v2207_v25  ;;  %v1844_v25 = vld [vmem:[%s2763_s5] ss:$0 sm:$0xff]  ;;  %s2288_s5 = smov [#allocation10]  }
0x140f   :  { %s1766_s25 = sshll.u32 %s2288_s5, 4  ;;  %s1767_s25 = int_to_ptr.vmem [resolvable:$true] %s1766_s25 }
0x1410   :  { %2208 = vrcp.f32 %v1495_v3  ;;  %s2254_s26 = scalar_lea.vmem %s1767_s25, 1024  ;;  %p2259_p11 = scmp.lt.s32.totalorder %s1767_s25, %s1767_s25 }
0x1411   :  { %p2255_p10 = scmp.ne.s32.totalorder %s1767_s25, %s2254_s26  ;;  %p2260_p12 = scmp.lt.s32.totalorder %s2254_s26, %s2254_s26 }
0x1413   :  { %p2261_p13 = por %p2260_p12, %p2259_p11 }
0x1415   :  { %p2262_p0 = pnand %p2261_p13, %p2255_p10 }
0x141d   :  { %v2209_v5 = vpop.eup %2208 }
0x141e   :  { %v1499_v14 = vmul.f32 %v2209_v5, %v1351_v34 }
0x1450   :  { %v1478_v2 = vpop.permute.xlu1 %1477 }
0x1451   :  { %v1480_v9 = vmul.f32 %v2689_v7, %v1478_v2 }
0x1453   :  { %1482 = vrot.lane.b32.xlu1 %v1480_v9, %s2287_s0 }
0x146e   :  { %v1502_v8 = vpop.permute.xlu0 %1501 }
0x146f   :  { %v1504_v0 = vmul.f32 %v2209_v5, %v1502_v8 }
0x1471   :  { %1506 = vrot.lane.b32.xlu0 %v1504_v0, %s2287_s0 }
0x14c5   :  { %v1483_v56 = vpop.permute.xlu1 %1482 }
0x14c6   :  { %v1485_v11 = vadd.f32 %v1483_v56, %v1475_v10 }
0x14c8   :  { %2210 = vtanh.f32 %v1485_v11 }
0x14d5   :  { %v2211_v12 = vpop.eup %2210 }
0x14d6   :  { %1488 = vrot.lane.b32.xlu1 %v2211_v12, %s2281_s24 }
0x14da   :  { %557 = vrot.lane.b32.xlu1 %v2481_v20, %s2287_s0  ;;  %v2083_v20 = vld [vmem:[#allocation8] sm:$0xff]  }
0x14db   :  { %2047 = vmatprep.subr.bf16.mxu1 %v2083_v20 }
0x14dc   :  { %2048 = vmatpush3.bf16.msra.mxu1 %v2083_v20 }
0x14de   :  { %885 = vrot.lane.b32.xlu1 %v2561_v58, %s2287_s0 }
0x14e2   :  { %1207 = vrot.lane.b32.xlu1 %v2646_v53, %s2287_s0 }
0x14e3   :  { %v1507_v15 = vpop.permute.xlu0 %1506 }
0x14e4   :  { %v1509_v17 = vadd.f32 %v1507_v15, %v1499_v14 }
0x14e6   :  { %2212 = vtanh.f32 %v1509_v17  ;;  %891 = vrot.lane.b32.xlu1 %v2566_v6, %s2287_s0 }
0x14f3   :  { %v2213_v32 = vpop.eup %2212 }
0x14f4   :  { %1512 = vrot.lane.b32.xlu0 %v2213_v32, %s2281_s24 }
0x14f8   :  { %394 = vrot.lane.b32.xlu0 %v2441_v28, %s2287_s0 }
0x14fc   :  { %1365 = vrot.lane.b32.xlu0 %v2678_v40, %s2287_s0 }
0x1500   :  { %721 = vrot.lane.b32.xlu0 %v2521_v13, %s2287_s0 }
0x1504   :  { %1049 = vrot.lane.b32.xlu0 %v2606_v62, %s2287_s0 }
0x1508   :  { %727 = vrot.lane.b32.xlu0 %v2526_v16, %s2287_s0 }
0x150c   :  { %1043 = vrot.lane.b32.xlu0 %v2601_v54, %s2287_s0  ;;  %v2084_v54 = vld [vmem:[#allocation8 + $0x18] sm:$0xff]  }
0x150d   :  { %2033 = vmatprep.subr.bf16.mxu0 %v2084_v54 }
0x150e   :  { %2034 = vmatpush3.bf16.msra.mxu0 %v2084_v54 }
0x1510   :  { %399 = vrot.lane.b32.xlu0 %v2446_v33, %s2287_s0  ;;  %v2085_v33 = vld [vmem:[#allocation8 + $0x10] sm:$0xff]  }
0x1511   :  { %2035 = vmatprep.subr.bf16.mxu0 %v2085_v33 }
0x1512   :  { %2036 = vmatpush3.bf16.msra.mxu0 %v2085_v33 }
0x1514   :  { %1359 = vrot.lane.b32.xlu0 %v2673_v36, %s2287_s0 }
0x1548   :  { %v1489_v28 = vpop.permute.xlu1 %1488 }
0x1549   :  { %v1491_v26 = vmul.f32 %v2689_v7, %v1489_v28 }
0x154c   :  { %v558_v58 = vpop.permute.xlu1 %557 }
0x154d   :  { %561 = vst.msk [vmem:[#allocation3 + $0x8] sm:$0xff] %vm117_vm1, %v558_v58 }
0x1550   :  { %v886_v13 = vpop.permute.xlu1 %885 }
0x1551   :  { %889 = vst.msk [vmem:[#allocation3 + $0x18] sm:$0xff] %vm117_vm1, %v886_v13 }
0x1554   :  { %v1208_v6 = vpop.permute.xlu1 %1207  ;;  %v1528_v52 = vld [vmem:[#allocation3 + $0x8] sm:$0xff] }
0x1555   :  { %1211 = vst.msk [vmem:[#allocation4 + $0x10] sm:$0xff] %vm117_vm1, %v1208_v6 }
0x1558   :  { %v892_v16 = vpop.permute.xlu1 %891  ;;  %v1530_v34 = vld [vmem:[#allocation3 + $0x18] sm:$0xff] }
0x1559   :  { %895 = vst.msk [vmem:[#allocation4 + $0x20] sm:$0xff] %vm117_vm1, %v892_v16 }
0x155c   :  { %v1545_v46 = vld [vmem:[#allocation4 + $0x10] sm:$0xff] }
0x1560   :  { %v1547_v49 = vld [vmem:[#allocation4 + $0x20] sm:$0xff] }
0x1566   :  { %v1513_v62 = vpop.permute.xlu0 %1512 }
0x1567   :  { %v1515_v53 = vmul.f32 %v2209_v5, %v1513_v62 }
0x1569   :  { %1523 = vrot.lane.b32.xlu1 %v1515_v53, %s2287_s0 }
0x156a   :  { %v395_v19 = vpop.permute.xlu0 %394 }
0x156b   :  { %397 = vst.msk [vmem:[#allocation3] sm:$0xff] %vm117_vm1, %v395_v19 }
0x156d   :  { %1201 = vrot.lane.b32.xlu1 %v2641_v50, %s2287_s0 }
0x156e   :  { %v1366_v21 = vpop.permute.xlu0 %1365 }
0x156f   :  { %1369 = vst.msk [vmem:[#allocation4 + $0x8] sm:$0xff] %vm117_vm1, %v1366_v21 }
0x1571   :  { %563 = vrot.lane.b32.xlu1 %v2486_v23, %s2287_s0 }
0x1572   :  { %v722_v22 = vpop.permute.xlu0 %721  ;;  %v1527_v24 = vld [vmem:[#allocation3] sm:$0xff] }
0x1573   :  { %725 = vst.msk [vmem:[#allocation3 + $0x10] sm:$0xff] %vm117_vm1, %v722_v22  ;;  %v1535_v27 = vpack.c.bf16 %v1528_v52, %v1527_v24 }
0x1575   :  { %1517 = vrot.lane.b32.xlu1 %v1491_v26, %s2287_s0  ;;  %2049 = vmatprep.mubr.msk.bf16.mxu1 %vm117_vm1, %v1535_v27 }
0x1576   :  { %v1050_v30 = vpop.permute.xlu0 %1049  ;;  %v1544_v41 = vld [vmem:[#allocation4 + $0x8] sm:$0xff] }
0x1577   :  { %1053 = vst.msk [vmem:[#allocation4 + $0x18] sm:$0xff] %vm117_vm1, %v1050_v30 }
0x157a   :  { %v728_v50 = vpop.permute.xlu0 %727  ;;  %v1529_v31 = vld [vmem:[#allocation3 + $0x10] sm:$0xff] }
0x157b   :  { %731 = vst.msk [vmem:[#allocation4 + $0x28] sm:$0xff] %vm117_vm1, %v728_v50  ;;  %v1536_v23 = vpack.c.bf16 %v1530_v34, %v1529_v31 }
0x157d   :  { %2050 = vmatmul.mubr.msk.bf16.vlgmr.msra.gmra.mxu1 %vm117_vm1, %v1536_v23 }
0x157e   :  { %v1044_v38 = vpop.permute.xlu0 %1043  ;;  %v1546_v40 = vld [vmem:[#allocation4 + $0x18] sm:$0xff] }
0x157f   :  { %1047 = vst.msk [vmem:[#allocation3 + $0x20] sm:$0xff] %vm117_vm1, %v1044_v38  ;;  %v1552_v48 = vpack.c.bf16 %v1546_v40, %v1545_v46 }
0x1582   :  { %v400_v47 = vpop.permute.xlu0 %399  ;;  %v1548_v43 = vld [vmem:[#allocation4 + $0x28] sm:$0xff] }
0x1583   :  { %403 = vst.msk [vmem:[#allocation4 + $0x38] sm:$0xff] %vm117_vm1, %v400_v47  ;;  %v1553_v35 = vpack.c.bf16 %v1548_v43, %v1547_v49 }
0x1586   :  { %v1360_v36 = vpop.permute.xlu0 %1359  ;;  %v1531_v55 = vld [vmem:[#allocation3 + $0x20] sm:$0xff] }
0x1587   :  { %1363 = vst.msk [vmem:[#allocation3 + $0x30] sm:$0xff] %vm117_vm1, %v1360_v36 }
0x158a   :  { %v1550_v29 = vld [vmem:[#allocation4 + $0x38] sm:$0xff] }
0x158e   :  { %v1533_v60 = vld [vmem:[#allocation3 + $0x30] sm:$0xff] }
0x15db   :  { %v1524_v37 = vpop.permute.xlu1 %1523 }
0x15dc   :  { %1526 = vst.msk [vmem:[#allocation4] sm:$0xff] %vm117_vm1, %v1524_v37 }
0x15df   :  { %v1202_v39 = vpop.permute.xlu1 %1201 }
0x15e0   :  { %1205 = vst.msk [vmem:[#allocation3 + $0x28] sm:$0xff] %vm117_vm1, %v1202_v39 }
0x15e3   :  { %v564_v42 = vpop.permute.xlu1 %563  ;;  %v1543_v44 = vld [vmem:[#allocation4] sm:$0xff] }
0x15e4   :  { %567 = vst.msk [vmem:[#allocation4 + $0x30] sm:$0xff] %vm117_vm1, %v564_v42  ;;  %v1551_v45 = vpack.c.bf16 %v1544_v41, %v1543_v44 }
0x15e6   :  { %2037 = vmatprep.mubr.msk.bf16.mxu0 %vm117_vm1, %v1551_v45 }
0x15e7   :  { %v1518_v51 = vpop.permute.xlu1 %1517  ;;  %2038 = vmatmul.mubr.msk.bf16.vlgmr.msra.gmra.mxu0 %vm117_vm1, %v1552_v48  ;;  %v1532_v57 = vld [vmem:[#allocation3 + $0x28] sm:$0xff] }
0x15e8   :  { %1521 = vst.msk [vmem:[#allocation3 + $0x38] sm:$0xff] %vm117_vm1, %v1518_v51  ;;  %2041 = vmatprep.mubr.msk.bf16.mxu0 %vm117_vm1, %v1553_v35  ;;  %v1537_v59 = vpack.c.bf16 %v1532_v57, %v1531_v55 }
0x15ea   :  { %2053 = vmatprep.mubr.msk.bf16.mxu1 %vm117_vm1, %v1537_v59 }
0x15eb   :  { %v1549_v4 = vld [vmem:[#allocation4 + $0x30] sm:$0xff] }
0x15ec   :  { %v1554_v61 = vpack.c.bf16 %v1550_v29, %v1549_v4 }
0x15ef   :  { %2042 = vmatmul.mubr.msk.bf16.gmra.mxu0 %vm117_vm1, %v1554_v61  ;;  %v1534_v63 = vld [vmem:[#allocation3 + $0x38] sm:$0xff] }
0x15f0   :  { %v1538_v1 = vpack.c.bf16 %v1534_v63, %v1533_v60 }
0x15f2   :  { %2054 = vmatmul.mubr.msk.bf16.gmra.mxu1 %vm117_vm1, %v1538_v1 }
0x163d   :  { %v2051_v7 = vpop.f32.mrf.mxu1 }
0x163f   :  { %v1707_v2 = vpop.f32.mrf.mxu1 }
0x1641   :  { %v2052_v5 = vpop.f32.mrf.mxu1 }
0x1643   :  { %v1710_v14 = vpop.f32.mrf.mxu1 }
0x16a7   :  { %v2039_v9 = vpop.f32.mrf.mxu0 }
0x16a8   :  { %v1716_v3 = vadd.f32 %v2051_v7, %v2039_v9 }
0x16a9   :  { %v1618_v8 = vpop.f32.mrf.mxu0 }
0x16aa   :  { %v1747_v0 = vadd.f32 %v1844_v25, %v1716_v3  ;;  %v1708_v10 = vadd.f32 %v1707_v2, %v1618_v8 }
0x16ab   :  { %v2040_v56 = vpop.f32.mrf.mxu0 }
0x16ac   :  { %1755 = vst [vmem:[#allocation10 + $0x10] sm:$0xff] %v1747_v0  ;;  %v1745_v11 = vadd.f32 %v1844_v25, %v1708_v10  ;;  %v1719_v12 = vadd.f32 %v2052_v5, %v2040_v56 }
0x16ad   :  { %v1621_v15 = vpop.f32.mrf.mxu0 }
0x16ae   :  { %1753 = vst [vmem:[#allocation10] sm:$0xff] %v1745_v11  ;;  %v1748_v17 = vadd.f32 %v1844_v25, %v1719_v12  ;;  %v1711_v32 = vadd.f32 %v1710_v14, %v1621_v15 }
0x16af   :  { %v2043_v18 = vpop.f32.mrf.mxu0 }
0x16b0   :  { %1756 = vst [vmem:[#allocation10 + $0x18] sm:$0xff] %v1748_v17  ;;  %v1746_v20 = vadd.f32 %v1844_v25, %v1711_v32 }
0x16b1   :  { %v1634_v28 = vpop.f32.mrf.mxu0 }
0x16b2   :  { %1754 = vst [vmem:[#allocation10 + $0x8] sm:$0xff] %v1746_v20  ;;  %v2055_v58 = vpop.f32.mrf.mxu1 }
0x16b3   :  { %v1732_v13 = vadd.f32 %v2055_v58, %v2043_v18  ;;  %v2044_v6 = vpop.f32.mrf.mxu0 }
0x16b4   :  { %v1723_v16 = vpop.f32.mrf.mxu1 }
0x16b5   :  { %v1751_v54 = vadd.f32 %v1844_v25, %v1732_v13  ;;  %v1724_v33 = vadd.f32 %v1723_v16, %v1634_v28  ;;  %v1637_v21 = vpop.f32.mrf.mxu0 }
0x16b6   :  { %v2056_v62 = vpop.f32.mrf.mxu1 }
0x16b7   :  { %1759 = vst [vmem:[#allocation10 + $0x30] sm:$0xff] %v1751_v54  ;;  %v1749_v53 = vadd.f32 %v1844_v25, %v1724_v33  ;;  %v1735_v19 = vadd.f32 %v2056_v62, %v2044_v6 }
0x16b8   :  { %v1726_v22 = vpop.f32.mrf.mxu1 }
0x16b9   :  { %1757 = vst [vmem:[#allocation10 + $0x20] sm:$0xff] %v1749_v53  ;;  %v1752_v24 = vadd.f32 %v1844_v25, %v1735_v19  ;;  %v1727_v52 = vadd.f32 %v1726_v22, %v1637_v21 }
0x16bb   :  { %1760 = vst [vmem:[#allocation10 + $0x38] sm:$0xff] %v1752_v24  ;;  %v1750_v26 = vadd.f32 %v1844_v25, %v1727_v52 }
0x16bd   :  { %1758 = vst [vmem:[#allocation10 + $0x28] sm:$0xff] %v1750_v26 }
0x16be   :  { %2265 = shalt.err (!%p2262_p0)
}
0x16bf   :  { %s2289_s27 = smov 128   ;;  %s2290_s28 = smov 8  }
0x16c0   :  { %1772 = dma.vmem_to_hbm [thread:$0]  %s1767_s25, 1024, %s2764_s6, [#allocation7], %s2289_s27, %s2289_s27, %s2290_s28  }
0x16c1   :  { %2278 = dma.done.wait [#allocation7], 1024  }
0x16c2   :  { %2279 = vsyncadd [#allocation7], 4294966272 }
0x16c3   :  { %1776 = vsyncpa [#allocation6], 1 }
0x16c4   :  { %1777 = vsyncpa [#allocation9], 1 }
0x16c5   :  { %1778 = vsyncpa [#allocation7], 1 }

</bundles_post_ra>
